<compile_context>
chip_gen: v7x
topology: tpu7x:2x2x1
jax: 0.10.0
libtpu: 0.0.40
codegen_flags: <defaults>
</compile_context>

<pallas_src>
import functools

import jax
import jax.numpy as jnp
from jax import lax
from jax.experimental import pallas as pl
from jax.experimental.pallas import tpu as pltpu

_LN_EPS = 1e-5


def _round_up(x, m):
    return ((x + m - 1) // m) * m


# ----------------------------------------------------------------------------
# In-kernel helpers
# ----------------------------------------------------------------------------
def _res_block(x_bf16, w1, b1, w2, wres, bsum, gamma, beta):
    """ResidualBlock: LN(relu(x@W1+b1)@W2 + x@Wres + (b2+bres)) -> bf16.

    Two separate matmuls (no fused [W1|Wres] lane split); bf16 MXU inputs,
    f32 accumulation; LayerNorm math in f32; emits bf16 activations.
    """
    h = jnp.dot(x_bf16, w1, preferred_element_type=jnp.float32) + b1
    h = jnp.maximum(h, 0.0)
    # dropout (p=0.2) is inference-mode identity
    y = (jnp.dot(h.astype(jnp.bfloat16), w2, preferred_element_type=jnp.float32)
         + jnp.dot(x_bf16, wres, preferred_element_type=jnp.float32)
         + bsum)
    mean = jnp.mean(y, axis=-1, keepdims=True)
    var = jnp.mean(jnp.square(y - mean), axis=-1, keepdims=True)
    out = (y - mean) * lax.rsqrt(var + _LN_EPS) * gamma + beta
    return out.astype(jnp.bfloat16)


# ----------------------------------------------------------------------------
# Fused decoder kernel
# ----------------------------------------------------------------------------
def _decoder_kernel(num_other, *refs):
    # refs: e, cov_flat, [ow1, ow2, owres, ovec]?, lw1, lw2, lwres, lb1, lvec,
    #       tw1, tb1, twres, tw2, tvec, out_pad, y_pre_ln_pad
    e_ref, cov_ref = refs[0], refs[1]
    out_ref, ydbg_ref = refs[-2], refs[-1]
    k = 2
    if num_other > 0:
        ow1_ref, ow2_ref, owres_ref, ovec_ref = refs[2:6]
        k = 6
    (lw1_ref, lw2_ref, lwres_ref, lb1_ref, lvec_ref,
     tw1_ref, tb1_ref, twres_ref, tw2_ref, tvec_ref) = refs[k:k + 10]

    x = e_ref[...].astype(jnp.bfloat16)          # single cast at entry

    # (layer_num - 1) "other" ResidualBlocks (weights stacked along axis 0)
    for l in range(num_other):
        v = ovec_ref[l]                          # (4, hidden) f32: b1|b2+bres|gamma|beta
        x = _res_block(x, ow1_ref[l], v[0:1], ow2_ref[l], owres_ref[l],
                       v[1:2], v[2:3], v[3:4])

    # last decoder layer: (rows, hidden) -> (rows, p*H)
    lv = lvec_ref[...]                           # (3, p*H) f32: b2+bres|gamma|beta
    g = _res_block(x, lw1_ref[...], lb1_ref[...], lw2_ref[...], lwres_ref[...],
                   lv[0:1], lv[1:2], lv[2:3])

    # temporal decoder: the per-(b,h) ResidualBlock on [matrixD_h | cov_h] is
    # folded into lane-dense 2-D matmuls via block-diagonal weights whose
    # output columns are zero-padded to H_pad (multiple of 128) so the final
    # store is an unmasked, full-width vst.
    # TODO(synk): for large horizons (H*(temporal_hidden+1) > ~256) switch to a
    # (b*H, p+r_hat) dense-temporal formulation instead of block-diagonal weights.
    xcat = jnp.concatenate([g, cov_ref[...].astype(jnp.bfloat16)], axis=1)
    tv = tvec_ref[...]                           # (3, H_pad) f32: b2+bres|gamma|beta
    h1 = jnp.dot(xcat, tw1_ref[...], preferred_element_type=jnp.float32) + tb1_ref[...]
    h1 = jnp.maximum(h1, 0.0)
    y = (jnp.dot(h1.astype(jnp.bfloat16), tw2_ref[...], preferred_element_type=jnp.float32)
         + jnp.dot(xcat, twres_ref[...], preferred_element_type=jnp.float32)
         + tv[0:1])
    ydbg_ref[...] = y.astype(ydbg_ref.dtype)     # pre-LayerNorm value (for validation)

    # Final LayerNorm is nn.LayerNorm(1): over a single feature mean == y and
    # var == 0 exactly, so the normalised term vanishes and out == beta.
    centered = y - y
    out = centered * lax.rsqrt(centered * centered + _LN_EPS) * tv[1:2] + tv[2:3]
    out_ref[...] = out.astype(out_ref.dtype)


# ----------------------------------------------------------------------------
# One-time (outside the forward path) parameter packing
# ----------------------------------------------------------------------------
def _block_diag(w, n):
    """w: (r, c) -> (n*r, n*c) block-diagonal with w on the diagonal."""
    r, c = w.shape
    eye = jnp.eye(n, dtype=w.dtype)
    return (eye[:, None, :, None] * w[None, :, None, :]).reshape(n * r, n * c)


def pack_decoder_params(params, H, p):
    """Pack f32 decoder params into MXU-friendly kernel operands.

    Call ONCE at parameter-construction time; decoder_forward takes the packed
    dict directly, so no packing / block-diag construction runs per call.
    """
    H_pad = _round_up(H, 128)
    packed = {}

    other = params["other"]
    if other:
        packed["ow1"] = jnp.stack([bp[0] for bp in other]).astype(jnp.bfloat16)
        packed["ow2"] = jnp.stack([bp[2] for bp in other]).astype(jnp.bfloat16)
        packed["owres"] = jnp.stack([bp[4] for bp in other]).astype(jnp.bfloat16)
        packed["ovec"] = jnp.stack(
            [jnp.concatenate([bp[1], bp[3] + bp[5], bp[6], bp[7]], axis=0)
             for bp in other]).astype(jnp.float32)

    w1, b1, w2, b2, wres, bres, gamma, beta = params["last"]
    packed["lw1"] = w1.astype(jnp.bfloat16)
    packed["lw2"] = w2.astype(jnp.bfloat16)
    packed["lwres"] = wres.astype(jnp.bfloat16)
    packed["lb1"] = b1.astype(jnp.float32)
    packed["lvec"] = jnp.concatenate([b2 + bres, gamma, beta], axis=0).astype(jnp.float32)

    # temporal block: block-diagonalize so the kernel stays 2-D lane-dense;
    # pad all output-width-H tensors to H_pad so the output store is unmasked.
    w1, b1, w2, b2, wres, bres, gamma, beta = params["temporal"]

    def pad_cols(a):
        return jnp.pad(a, ((0, 0), (0, H_pad - a.shape[1])))

    tw1 = jnp.concatenate([_block_diag(w1[:p], H), _block_diag(w1[p:], H)], axis=0)
    twres = jnp.concatenate([_block_diag(wres[:p], H), _block_diag(wres[p:], H)], axis=0)
    tw2 = _block_diag(w2, H)
    packed["tw1"] = tw1.astype(jnp.bfloat16)                  # (pH+rH, H*th)
    packed["twres"] = pad_cols(twres).astype(jnp.bfloat16)    # (pH+rH, H_pad)
    packed["tw2"] = pad_cols(tw2).astype(jnp.bfloat16)        # (H*th, H_pad)
    packed["tb1"] = jnp.tile(b1, (1, H)).astype(jnp.float32)  # (1, H*th)
    packed["tvec"] = jnp.concatenate(
        [pad_cols(jnp.tile(b2 + bres, (1, H))),
         pad_cols(jnp.tile(gamma, (1, H))),
         pad_cols(jnp.tile(beta, (1, H)))], axis=0).astype(jnp.float32)  # (3, H_pad)
    return packed


# ----------------------------------------------------------------------------
# Parameter construction (deterministic, synthetic; PyTorch-Linear-style init)
# ----------------------------------------------------------------------------
def make_residual_block_params(key, in_dim, hidden_dim, out_dim):
    ks = jax.random.split(key, 6)
    s1 = 1.0 / jnp.sqrt(in_dim)
    s2 = 1.0 / jnp.sqrt(hidden_dim)
    w1 = jax.random.uniform(ks[0], (in_dim, hidden_dim), jnp.float32, -s1, s1)
    b1 = jax.random.uniform(ks[1], (1, hidden_dim), jnp.float32, -s1, s1)
    w2 = jax.random.uniform(ks[2], (hidden_dim, out_dim), jnp.float32, -s2, s2)
    b2 = jax.random.uniform(ks[3], (1, out_dim), jnp.float32, -s2, s2)
    wres = jax.random.uniform(ks[4], (in_dim, out_dim), jnp.float32, -s1, s1)
    bres = jax.random.uniform(ks[5], (1, out_dim), jnp.float32, -s1, s1)
    gamma = jnp.ones((1, out_dim), jnp.float32)
    beta = jnp.zeros((1, out_dim), jnp.float32)
    return (w1, b1, w2, b2, wres, bres, gamma, beta)


def make_decoder_params(key, layer_num, hidden_dim, r_hat, H, p, temporal_hidden):
    keys = jax.random.split(key, layer_num + 1)
    other = [make_residual_block_params(keys[i], hidden_dim, hidden_dim, hidden_dim)
             for i in range(layer_num - 1)]
    last = make_residual_block_params(keys[layer_num - 1], hidden_dim, hidden_dim, p * H)
    temporal = make_residual_block_params(keys[layer_num], p + r_hat, temporal_hidden, 1)
    return {"other": other, "last": last, "temporal": temporal}


# ----------------------------------------------------------------------------
# Chip-aware tiling
# ----------------------------------------------------------------------------
def _vmem_capacity_bytes():
    try:
        return int(pltpu.get_tpu_info().vmem_capacity_bytes)
    except Exception:
        return 64 * 1024 * 1024        # conservative default (v7x per-TC VMEM)


def _vmem_limit_bytes(cap):
    # ~48 MiB scoped limit on 64-MiB chips (v7x), ~96 MiB on 128-MiB (v5e/v6e)
    return max(32 * 1024 * 1024, min(cap * 3 // 4, 100 * 1024 * 1024))


def _pick_row_tile(b, vmem_cap):
    if b <= 16:
        return b                       # single tile; per-step overhead dominates
    # 256-row tiles on 64-MiB v7x, 512 on 128-MiB v5e/v6e
    big = 256 if vmem_cap <= 64 * 1024 * 1024 else 512
    if b <= 2 * big:
        # ensure >=2 grid steps so both v7x TensorCores get work
        return min(big, ((pl.cdiv(b, 2) + 7) // 8) * 8)
    return big


def _const_index_map(ndim):
    return lambda i, _nd=ndim: (0,) * _nd


# ----------------------------------------------------------------------------
# Decoder forward (single fused pallas_call)
# ----------------------------------------------------------------------------
@functools.partial(jax.jit, static_argnames=("H", "p",
                                             "fold_degenerate_final_layernorm",
                                             "return_pre_layernorm"))
def decoder_forward(packed, e, covariates_future, *, H, p,
                    fold_degenerate_final_layernorm=False,
                    return_pre_layernorm=False):
    b, hidden_dim = e.shape
    r_hat = covariates_future.shape[-1]
    H_pad = _round_up(H, 128)

    if fold_degenerate_final_layernorm:
        # Exact algebraic shortcut: nn.LayerNorm over a single feature returns
        # its bias for every input, so the module output is just beta.
        beta = packed["tvec"][2, :H].reshape(1, H, 1)
        return jnp.broadcast_to(beta, (b, H, 1)).astype(jnp.float32)

    cov_flat = covariates_future.reshape(b, H * r_hat)
    num_other = packed["ow1"].shape[0] if "ow1" in packed else 0

    vmem_cap = _vmem_capacity_bytes()
    row_tile = _pick_row_tile(b, vmem_cap)
    grid = (pl.cdiv(b, row_tile),)

    def row_spec(width):
        return pl.BlockSpec((row_tile, width), lambda i: (i, 0))

    in_specs = [row_spec(hidden_dim), row_spec(H * r_hat)]
    operands = [e, cov_flat]
    wkeys = (["ow1", "ow2", "owres", "ovec"] if num_other else []) + \
            ["lw1", "lw2", "lwres", "lb1", "lvec",
             "tw1", "tb1", "twres", "tw2", "tvec"]
    for name in wkeys:
        arr = packed[name]
        operands.append(arr)
        # full-array block, VMEM-resident across all row tiles
        in_specs.append(pl.BlockSpec(arr.shape, _const_index_map(arr.ndim)))

    out_specs = (pl.BlockSpec((row_tile, H_pad), lambda i: (i, 0)),
                 pl.BlockSpec((row_tile, H_pad), lambda i: (i, 0)))
    out_shape = (jax.ShapeDtypeStruct((b, H_pad), jnp.float32),
                 jax.ShapeDtypeStruct((b, H_pad), jnp.float32))

    # advisory cost estimate
    pH, rH = p * H, H * r_hat
    Hth = packed["tw1"].shape[1]
    mm = ([(hidden_dim, hidden_dim)] * (3 * num_other)
          + [(hidden_dim, hidden_dim), (hidden_dim, pH), (hidden_dim, pH),
             (pH + rH, Hth), (Hth, H_pad), (pH + rH, H_pad)])
    flops = sum(2 * b * kk * nn for kk, nn in mm)
    bytes_accessed = sum(int(x.size) * x.dtype.itemsize for x in operands) + 2 * b * H_pad * 4
    cost = pl.CostEstimate(flops=flops, transcendentals=0, bytes_accessed=bytes_accessed)

    out_pad, y_pad = pl.pallas_call(
        functools.partial(_decoder_kernel, num_other),
        out_shape=out_shape,
        grid=grid,
        in_specs=in_specs,
        out_specs=out_specs,
        compiler_params=pltpu.CompilerParams(
            dimension_semantics=("parallel",),
            vmem_limit_bytes=_vmem_limit_bytes(vmem_cap)),
        cost_estimate=cost,
    )(*operands)

    out = out_pad[:, :H].reshape(b, H, 1)
    if return_pre_layernorm:
        return out, y_pad[:, :H]
    return out


# ----------------------------------------------------------------------------
# Pure-JAX f32 reference (for correctness checks)
# ----------------------------------------------------------------------------
def _reference_forward(params, e, covariates_future, H, p):
    def res_block(bp, x):
        w1, b1, w2, b2, wres, bres, gamma, beta = bp
        h = jax.nn.relu(x @ w1 + b1)
        y = (h @ w2 + b2) + (x @ wres + bres)
        mean = y.mean(-1, keepdims=True)
        var = jnp.square(y - mean).mean(-1, keepdims=True)
        return (y - mean) * lax.rsqrt(var + _LN_EPS) * gamma + beta, y

    x = e
    for bp in params["other"]:
        x, _ = res_block(bp, x)
    g, _ = res_block(params["last"], x)
    b = e.shape[0]
    r_hat = covariates_future.shape[-1]
    matD = g.reshape(b, H, p)
    xcat = jnp.concatenate([matD, covariates_future], axis=-1).reshape(b * H, p + r_hat)
    out, y_pre = res_block(params["temporal"], xcat)
    return out.reshape(b, H, 1), y_pre.reshape(b, H)


# ----------------------------------------------------------------------------
# Main
# ----------------------------------------------------------------------------
if __name__ == "__main__":
    layer_num = 3
    hidden_dim = 32
    r_hat = 4
    H = 8
    p = 4
    temporal_hidden = 16
    batch = 2

    key = jax.random.PRNGKey(0)
    k_param, k_e, k_cov = jax.random.split(key, 3)

    params = make_decoder_params(k_param, layer_num, hidden_dim, r_hat, H, p,
                                 temporal_hidden)
    packed = pack_decoder_params(params, H, p)   # one-time, outside forward path

    e = jax.random.normal(k_e, (batch, hidden_dim), jnp.float32)
    covariates_future = jax.random.normal(k_cov, (batch, H, r_hat), jnp.float32)

    out, y_pre = decoder_forward(packed, e, covariates_future, H=H, p=p,
                                 return_pre_layernorm=True)
    jax.block_until_ready(out)

    assert out.shape == (batch, H, 1), out.shape
    assert bool(jnp.all(jnp.isfinite(out))), "non-finite output"

    # end-to-end correctness checks vs pure-JAX f32 reference
    ref_out, ref_y_pre = _reference_forward(params, e, covariates_future, H, p)
    assert bool(jnp.allclose(out, ref_out, atol=1e-4)), "output mismatch vs reference"
    assert bool(jnp.allclose(y_pre, ref_y_pre, atol=1e-1, rtol=1e-1)), \
        "temporal pre-LayerNorm mismatch vs reference (bf16 tolerance)"

    # exact algebraic fold of the degenerate nn.LayerNorm(1) epilogue
    out_fold = decoder_forward(packed, e, covariates_future, H=H, p=p,
                               fold_degenerate_final_layernorm=True)
    assert bool(jnp.allclose(out, out_fold, atol=1e-6)), "fold path mismatch"

    print("KERNEL_OK")
</pallas_src>

<mosaic_0001>
module attributes {stable_mosaic.version = 11 : i64} {
  func.func @_decoder_kernel(%arg0: i32, %arg1: memref<2x32xf32, #tpu.memory_space<vmem>>, %arg2: memref<2x32xf32, #tpu.memory_space<vmem>>, %arg3: memref<2x32x32xbf16, #tpu.memory_space<vmem>>, %arg4: memref<2x32x32xbf16, #tpu.memory_space<vmem>>, %arg5: memref<2x32x32xbf16, #tpu.memory_space<vmem>>, %arg6: memref<2x4x32xf32, #tpu.memory_space<vmem>>, %arg7: memref<32x32xbf16, #tpu.memory_space<vmem>>, %arg8: memref<32x32xbf16, #tpu.memory_space<vmem>>, %arg9: memref<32x32xbf16, #tpu.memory_space<vmem>>, %arg10: memref<1x32xf32, #tpu.memory_space<vmem>>, %arg11: memref<3x32xf32, #tpu.memory_space<vmem>>, %arg12: memref<64x128xbf16, #tpu.memory_space<vmem>>, %arg13: memref<1x128xf32, #tpu.memory_space<vmem>>, %arg14: memref<64x128xbf16, #tpu.memory_space<vmem>>, %arg15: memref<128x128xbf16, #tpu.memory_space<vmem>>, %arg16: memref<3x128xf32, #tpu.memory_space<vmem>>, %arg17: memref<2x128xf32, #tpu.memory_space<vmem>>, %arg18: memref<2x128xf32, #tpu.memory_space<vmem>>) attributes {dimension_semantics = [#tpu.dimension_semantics<parallel>], iteration_bounds = array<i64: 1>, scalar_prefetch = 0 : i64, scratch_operands = 0 : i64, tpu.core_type = #tpu.core_type<tc>, window_params = [{transform_indices = @transform_0, window_bounds = array<i64: 2, 32>}, {transform_indices = @transform_1, window_bounds = array<i64: 2, 32>}, {pipeline_mode = #tpu.pipeline_mode<synchronous>, transform_indices = @transform_2, window_bounds = array<i64: 2, 32, 32>}, {pipeline_mode = #tpu.pipeline_mode<synchronous>, transform_indices = @transform_3, window_bounds = array<i64: 2, 32, 32>}, {pipeline_mode = #tpu.pipeline_mode<synchronous>, transform_indices = @transform_4, window_bounds = array<i64: 2, 32, 32>}, {pipeline_mode = #tpu.pipeline_mode<synchronous>, transform_indices = @transform_5, window_bounds = array<i64: 2, 4, 32>}, {pipeline_mode = #tpu.pipeline_mode<synchronous>, transform_indices = @transform_6, window_bounds = array<i64: 32, 32>}, {pipeline_mode = #tpu.pipeline_mode<synchronous>, transform_indices = @transform_7, window_bounds = array<i64: 32, 32>}, {pipeline_mode = #tpu.pipeline_mode<synchronous>, transform_indices = @transform_8, window_bounds = array<i64: 32, 32>}, {pipeline_mode = #tpu.pipeline_mode<synchronous>, transform_indices = @transform_9, window_bounds = array<i64: 1, 32>}, {pipeline_mode = #tpu.pipeline_mode<synchronous>, transform_indices = @transform_10, window_bounds = array<i64: 3, 32>}, {pipeline_mode = #tpu.pipeline_mode<synchronous>, transform_indices = @transform_11, window_bounds = array<i64: 64, 128>}, {pipeline_mode = #tpu.pipeline_mode<synchronous>, transform_indices = @transform_12, window_bounds = array<i64: 1, 128>}, {pipeline_mode = #tpu.pipeline_mode<synchronous>, transform_indices = @transform_13, window_bounds = array<i64: 64, 128>}, {pipeline_mode = #tpu.pipeline_mode<synchronous>, transform_indices = @transform_14, window_bounds = array<i64: 128, 128>}, {pipeline_mode = #tpu.pipeline_mode<synchronous>, transform_indices = @transform_15, window_bounds = array<i64: 3, 128>}, {transform_indices = @transform_16, window_bounds = array<i64: 2, 128>}, {transform_indices = @transform_17, window_bounds = array<i64: 2, 128>}]} {
    %c0 = arith.constant 0 : index
    %c0_0 = arith.constant 0 : index
    %0 = vector.load %arg1[%c0, %c0_0] : memref<2x32xf32, #tpu.memory_space<vmem>>, vector<2x32xf32>
    %1 = arith.truncf %0 : vector<2x32xf32> to vector<2x32xbf16>
    %c0_1 = arith.constant 0 : index
    %c0_2 = arith.constant 0 : index
    %c0_3 = arith.constant 0 : index
    %2 = vector.load %arg6[%c0_1, %c0_2, %c0_3] : memref<2x4x32xf32, #tpu.memory_space<vmem>>, vector<1x4x32xf32>
    %3 = vector.shape_cast %2 : vector<1x4x32xf32> to vector<4x32xf32>
    %c0_4 = arith.constant 0 : index
    %c0_5 = arith.constant 0 : index
    %c0_6 = arith.constant 0 : index
    %4 = vector.load %arg3[%c0_4, %c0_5, %c0_6] : memref<2x32x32xbf16, #tpu.memory_space<vmem>>, vector<1x32x32xbf16>
    %5 = vector.shape_cast %4 : vector<1x32x32xbf16> to vector<32x32xbf16>
    %6 = vector.extract_strided_slice %3 {offsets = [0, 0], sizes = [1, 32], strides = [1, 1]} : vector<4x32xf32> to vector<1x32xf32>
    %c0_7 = arith.constant 0 : index
    %c0_8 = arith.constant 0 : index
    %c0_9 = arith.constant 0 : index
    %7 = vector.load %arg4[%c0_7, %c0_8, %c0_9] : memref<2x32x32xbf16, #tpu.memory_space<vmem>>, vector<1x32x32xbf16>
    %8 = vector.shape_cast %7 : vector<1x32x32xbf16> to vector<32x32xbf16>
    %c0_10 = arith.constant 0 : index
    %c0_11 = arith.constant 0 : index
    %c0_12 = arith.constant 0 : index
    %9 = vector.load %arg5[%c0_10, %c0_11, %c0_12] : memref<2x32x32xbf16, #tpu.memory_space<vmem>>, vector<1x32x32xbf16>
    %10 = vector.shape_cast %9 : vector<1x32x32xbf16> to vector<32x32xbf16>
    %11 = vector.extract_strided_slice %3 {offsets = [1, 0], sizes = [1, 32], strides = [1, 1]} : vector<4x32xf32> to vector<1x32xf32>
    %12 = vector.extract_strided_slice %3 {offsets = [2, 0], sizes = [1, 32], strides = [1, 1]} : vector<4x32xf32> to vector<1x32xf32>
    %13 = vector.extract_strided_slice %3 {offsets = [3, 0], sizes = [1, 32], strides = [1, 1]} : vector<4x32xf32> to vector<1x32xf32>
    %cst = arith.constant dense<0.000000e+00> : vector<2x32xf32>
    %14 = tpu.matmul %1, %5, %cst {dimension_numbers = #tpu.dot_dimension_numbers<[1], [0], [0], [1], [0, 0, 1, 1], [], []>} : vector<2x32xbf16>, vector<32x32xbf16>, vector<2x32xf32> -> vector<2x32xf32>
    %15 = vector.broadcast %6 : vector<1x32xf32> to vector<2x32xf32>
    %16 = arith.addf %14, %15 : vector<2x32xf32>
    %cst_13 = arith.constant 0.000000e+00 : f32
    %17 = vector.broadcast %cst_13 : f32 to vector<2x32xf32>
    %18 = arith.maximumf %16, %17 : vector<2x32xf32>
    %19 = arith.truncf %18 : vector<2x32xf32> to vector<2x32xbf16>
    %cst_14 = arith.constant dense<0.000000e+00> : vector<2x32xf32>
    %20 = tpu.matmul %19, %8, %cst_14 {dimension_numbers = #tpu.dot_dimension_numbers<[1], [0], [0], [1], [0, 0, 1, 1], [], []>} : vector<2x32xbf16>, vector<32x32xbf16>, vector<2x32xf32> -> vector<2x32xf32>
    %cst_15 = arith.constant dense<0.000000e+00> : vector<2x32xf32>
    %21 = tpu.matmul %1, %10, %cst_15 {dimension_numbers = #tpu.dot_dimension_numbers<[1], [0], [0], [1], [0, 0, 1, 1], [], []>} : vector<2x32xbf16>, vector<32x32xbf16>, vector<2x32xf32> -> vector<2x32xf32>
    %22 = arith.addf %20, %21 : vector<2x32xf32>
    %23 = vector.broadcast %11 : vector<1x32xf32> to vector<2x32xf32>
    %24 = arith.addf %22, %23 : vector<2x32xf32>
    %cst_16 = arith.constant dense<0.000000e+00> : vector<2xf32>
    %25 = vector.multi_reduction <add>, %24, %cst_16 [1] : vector<2x32xf32> to vector<2xf32>
    %26 = vector.shape_cast %25 : vector<2xf32> to vector<2x1xf32>
    %cst_17 = arith.constant 3.200000e+01 : f32
    %27 = vector.broadcast %cst_17 : f32 to vector<2x1xf32>
    %28 = arith.divf %26, %27 : vector<2x1xf32>
    %29 = vector.broadcast %28 : vector<2x1xf32> to vector<2x32xf32>
    %30 = arith.subf %24, %29 : vector<2x32xf32>
    %31 = arith.mulf %30, %30 : vector<2x32xf32>
    %cst_18 = arith.constant dense<0.000000e+00> : vector<2xf32>
    %32 = vector.multi_reduction <add>, %31, %cst_18 [1] : vector<2x32xf32> to vector<2xf32>
    %33 = vector.shape_cast %32 : vector<2xf32> to vector<2x1xf32>
    %cst_19 = arith.constant 3.200000e+01 : f32
    %34 = vector.broadcast %cst_19 : f32 to vector<2x1xf32>
    %35 = arith.divf %33, %34 : vector<2x1xf32>
    %36 = vector.broadcast %28 : vector<2x1xf32> to vector<2x32xf32>
    %37 = arith.subf %24, %36 : vector<2x32xf32>
    %cst_20 = arith.constant 9.99999974E-6 : f32
    %38 = vector.broadcast %cst_20 : f32 to vector<2x1xf32>
    %39 = arith.addf %35, %38 : vector<2x1xf32>
    %40 = math.rsqrt %39 : vector<2x1xf32>
    %41 = vector.broadcast %40 : vector<2x1xf32> to vector<2x32xf32>
    %42 = arith.mulf %37, %41 : vector<2x32xf32>
    %43 = vector.broadcast %12 : vector<1x32xf32> to vector<2x32xf32>
    %44 = arith.mulf %42, %43 : vector<2x32xf32>
    %45 = vector.broadcast %13 : vector<1x32xf32> to vector<2x32xf32>
    %46 = arith.addf %44, %45 : vector<2x32xf32>
    %47 = arith.truncf %46 : vector<2x32xf32> to vector<2x32xbf16>
    %c1 = arith.constant 1 : index
    %c0_21 = arith.constant 0 : index
    %c0_22 = arith.constant 0 : index
    %48 = vector.load %arg6[%c1, %c0_21, %c0_22] : memref<2x4x32xf32, #tpu.memory_space<vmem>>, vector<1x4x32xf32>
    %49 = vector.shape_cast %48 : vector<1x4x32xf32> to vector<4x32xf32>
    %c1_23 = arith.constant 1 : index
    %c0_24 = arith.constant 0 : index
    %c0_25 = arith.constant 0 : index
    %50 = vector.load %arg3[%c1_23, %c0_24, %c0_25] : memref<2x32x32xbf16, #tpu.memory_space<vmem>>, vector<1x32x32xbf16>
    %51 = vector.shape_cast %50 : vector<1x32x32xbf16> to vector<32x32xbf16>
    %52 = vector.extract_strided_slice %49 {offsets = [0, 0], sizes = [1, 32], strides = [1, 1]} : vector<4x32xf32> to vector<1x32xf32>
    %c1_26 = arith.constant 1 : index
    %c0_27 = arith.constant 0 : index
    %c0_28 = arith.constant 0 : index
    %53 = vector.load %arg4[%c1_26, %c0_27, %c0_28] : memref<2x32x32xbf16, #tpu.memory_space<vmem>>, vector<1x32x32xbf16>
    %54 = vector.shape_cast %53 : vector<1x32x32xbf16> to vector<32x32xbf16>
    %c1_29 = arith.constant 1 : index
    %c0_30 = arith.constant 0 : index
    %c0_31 = arith.constant 0 : index
    %55 = vector.load %arg5[%c1_29, %c0_30, %c0_31] : memref<2x32x32xbf16, #tpu.memory_space<vmem>>, vector<1x32x32xbf16>
    %56 = vector.shape_cast %55 : vector<1x32x32xbf16> to vector<32x32xbf16>
    %57 = vector.extract_strided_slice %49 {offsets = [1, 0], sizes = [1, 32], strides = [1, 1]} : vector<4x32xf32> to vector<1x32xf32>
    %58 = vector.extract_strided_slice %49 {offsets = [2, 0], sizes = [1, 32], strides = [1, 1]} : vector<4x32xf32> to vector<1x32xf32>
    %59 = vector.extract_strided_slice %49 {offsets = [3, 0], sizes = [1, 32], strides = [1, 1]} : vector<4x32xf32> to vector<1x32xf32>
    %cst_32 = arith.constant dense<0.000000e+00> : vector<2x32xf32>
    %60 = tpu.matmul %47, %51, %cst_32 {dimension_numbers = #tpu.dot_dimension_numbers<[1], [0], [0], [1], [0, 0, 1, 1], [], []>} : vector<2x32xbf16>, vector<32x32xbf16>, vector<2x32xf32> -> vector<2x32xf32>
    %61 = vector.broadcast %52 : vector<1x32xf32> to vector<2x32xf32>
    %62 = arith.addf %60, %61 : vector<2x32xf32>
    %cst_33 = arith.constant 0.000000e+00 : f32
    %63 = vector.broadcast %cst_33 : f32 to vector<2x32xf32>
    %64 = arith.maximumf %62, %63 : vector<2x32xf32>
    %65 = arith.truncf %64 : vector<2x32xf32> to vector<2x32xbf16>
    %cst_34 = arith.constant dense<0.000000e+00> : vector<2x32xf32>
    %66 = tpu.matmul %65, %54, %cst_34 {dimension_numbers = #tpu.dot_dimension_numbers<[1], [0], [0], [1], [0, 0, 1, 1], [], []>} : vector<2x32xbf16>, vector<32x32xbf16>, vector<2x32xf32> -> vector<2x32xf32>
    %cst_35 = arith.constant dense<0.000000e+00> : vector<2x32xf32>
    %67 = tpu.matmul %47, %56, %cst_35 {dimension_numbers = #tpu.dot_dimension_numbers<[1], [0], [0], [1], [0, 0, 1, 1], [], []>} : vector<2x32xbf16>, vector<32x32xbf16>, vector<2x32xf32> -> vector<2x32xf32>
    %68 = arith.addf %66, %67 : vector<2x32xf32>
    %69 = vector.broadcast %57 : vector<1x32xf32> to vector<2x32xf32>
    %70 = arith.addf %68, %69 : vector<2x32xf32>
    %cst_36 = arith.constant dense<0.000000e+00> : vector<2xf32>
    %71 = vector.multi_reduction <add>, %70, %cst_36 [1] : vector<2x32xf32> to vector<2xf32>
    %72 = vector.shape_cast %71 : vector<2xf32> to vector<2x1xf32>
    %cst_37 = arith.constant 3.200000e+01 : f32
    %73 = vector.broadcast %cst_37 : f32 to vector<2x1xf32>
    %74 = arith.divf %72, %73 : vector<2x1xf32>
    %75 = vector.broadcast %74 : vector<2x1xf32> to vector<2x32xf32>
    %76 = arith.subf %70, %75 : vector<2x32xf32>
    %77 = arith.mulf %76, %76 : vector<2x32xf32>
    %cst_38 = arith.constant dense<0.000000e+00> : vector<2xf32>
    %78 = vector.multi_reduction <add>, %77, %cst_38 [1] : vector<2x32xf32> to vector<2xf32>
    %79 = vector.shape_cast %78 : vector<2xf32> to vector<2x1xf32>
    %cst_39 = arith.constant 3.200000e+01 : f32
    %80 = vector.broadcast %cst_39 : f32 to vector<2x1xf32>
    %81 = arith.divf %79, %80 : vector<2x1xf32>
    %82 = vector.broadcast %74 : vector<2x1xf32> to vector<2x32xf32>
    %83 = arith.subf %70, %82 : vector<2x32xf32>
    %cst_40 = arith.constant 9.99999974E-6 : f32
    %84 = vector.broadcast %cst_40 : f32 to vector<2x1xf32>
    %85 = arith.addf %81, %84 : vector<2x1xf32>
    %86 = math.rsqrt %85 : vector<2x1xf32>
    %87 = vector.broadcast %86 : vector<2x1xf32> to vector<2x32xf32>
    %88 = arith.mulf %83, %87 : vector<2x32xf32>
    %89 = vector.broadcast %58 : vector<1x32xf32> to vector<2x32xf32>
    %90 = arith.mulf %88, %89 : vector<2x32xf32>
    %91 = vector.broadcast %59 : vector<1x32xf32> to vector<2x32xf32>
    %92 = arith.addf %90, %91 : vector<2x32xf32>
    %93 = arith.truncf %92 : vector<2x32xf32> to vector<2x32xbf16>
    %c0_41 = arith.constant 0 : index
    %c0_42 = arith.constant 0 : index
    %94 = vector.load %arg11[%c0_41, %c0_42] : memref<3x32xf32, #tpu.memory_space<vmem>>, vector<3x32xf32>
    %c0_43 = arith.constant 0 : index
    %c0_44 = arith.constant 0 : index
    %95 = vector.load %arg7[%c0_43, %c0_44] : memref<32x32xbf16, #tpu.memory_space<vmem>>, vector<32x32xbf16>
    %c0_45 = arith.constant 0 : index
    %c0_46 = arith.constant 0 : index
    %96 = vector.load %arg10[%c0_45, %c0_46] : memref<1x32xf32, #tpu.memory_space<vmem>>, vector<1x32xf32>
    %c0_47 = arith.constant 0 : index
    %c0_48 = arith.constant 0 : index
    %97 = vector.load %arg8[%c0_47, %c0_48] : memref<32x32xbf16, #tpu.memory_space<vmem>>, vector<32x32xbf16>
    %c0_49 = arith.constant 0 : index
    %c0_50 = arith.constant 0 : index
    %98 = vector.load %arg9[%c0_49, %c0_50] : memref<32x32xbf16, #tpu.memory_space<vmem>>, vector<32x32xbf16>
    %99 = vector.extract_strided_slice %94 {offsets = [0, 0], sizes = [1, 32], strides = [1, 1]} : vector<3x32xf32> to vector<1x32xf32>
    %100 = vector.extract_strided_slice %94 {offsets = [1, 0], sizes = [1, 32], strides = [1, 1]} : vector<3x32xf32> to vector<1x32xf32>
    %101 = vector.extract_strided_slice %94 {offsets = [2, 0], sizes = [1, 32], strides = [1, 1]} : vector<3x32xf32> to vector<1x32xf32>
    %cst_51 = arith.constant dense<0.000000e+00> : vector<2x32xf32>
    %102 = tpu.matmul %93, %95, %cst_51 {dimension_numbers = #tpu.dot_dimension_numbers<[1], [0], [0], [1], [0, 0, 1, 1], [], []>} : vector<2x32xbf16>, vector<32x32xbf16>, vector<2x32xf32> -> vector<2x32xf32>
    %103 = vector.broadcast %96 : vector<1x32xf32> to vector<2x32xf32>
    %104 = arith.addf %102, %103 : vector<2x32xf32>
    %cst_52 = arith.constant 0.000000e+00 : f32
    %105 = vector.broadcast %cst_52 : f32 to vector<2x32xf32>
    %106 = arith.maximumf %104, %105 : vector<2x32xf32>
    %107 = arith.truncf %106 : vector<2x32xf32> to vector<2x32xbf16>
    %cst_53 = arith.constant dense<0.000000e+00> : vector<2x32xf32>
    %108 = tpu.matmul %107, %97, %cst_53 {dimension_numbers = #tpu.dot_dimension_numbers<[1], [0], [0], [1], [0, 0, 1, 1], [], []>} : vector<2x32xbf16>, vector<32x32xbf16>, vector<2x32xf32> -> vector<2x32xf32>
    %cst_54 = arith.constant dense<0.000000e+00> : vector<2x32xf32>
    %109 = tpu.matmul %93, %98, %cst_54 {dimension_numbers = #tpu.dot_dimension_numbers<[1], [0], [0], [1], [0, 0, 1, 1], [], []>} : vector<2x32xbf16>, vector<32x32xbf16>, vector<2x32xf32> -> vector<2x32xf32>
    %110 = arith.addf %108, %109 : vector<2x32xf32>
    %111 = vector.broadcast %99 : vector<1x32xf32> to vector<2x32xf32>
    %112 = arith.addf %110, %111 : vector<2x32xf32>
    %cst_55 = arith.constant dense<0.000000e+00> : vector<2xf32>
    %113 = vector.multi_reduction <add>, %112, %cst_55 [1] : vector<2x32xf32> to vector<2xf32>
    %114 = vector.shape_cast %113 : vector<2xf32> to vector<2x1xf32>
    %cst_56 = arith.constant 3.200000e+01 : f32
    %115 = vector.broadcast %cst_56 : f32 to vector<2x1xf32>
    %116 = arith.divf %114, %115 : vector<2x1xf32>
    %117 = vector.broadcast %116 : vector<2x1xf32> to vector<2x32xf32>
    %118 = arith.subf %112, %117 : vector<2x32xf32>
    %119 = arith.mulf %118, %118 : vector<2x32xf32>
    %cst_57 = arith.constant dense<0.000000e+00> : vector<2xf32>
    %120 = vector.multi_reduction <add>, %119, %cst_57 [1] : vector<2x32xf32> to vector<2xf32>
    %121 = vector.shape_cast %120 : vector<2xf32> to vector<2x1xf32>
    %cst_58 = arith.constant 3.200000e+01 : f32
    %122 = vector.broadcast %cst_58 : f32 to vector<2x1xf32>
    %123 = arith.divf %121, %122 : vector<2x1xf32>
    %124 = vector.broadcast %116 : vector<2x1xf32> to vector<2x32xf32>
    %125 = arith.subf %112, %124 : vector<2x32xf32>
    %cst_59 = arith.constant 9.99999974E-6 : f32
    %126 = vector.broadcast %cst_59 : f32 to vector<2x1xf32>
    %127 = arith.addf %123, %126 : vector<2x1xf32>
    %128 = math.rsqrt %127 : vector<2x1xf32>
    %129 = vector.broadcast %128 : vector<2x1xf32> to vector<2x32xf32>
    %130 = arith.mulf %125, %129 : vector<2x32xf32>
    %131 = vector.broadcast %100 : vector<1x32xf32> to vector<2x32xf32>
    %132 = arith.mulf %130, %131 : vector<2x32xf32>
    %133 = vector.broadcast %101 : vector<1x32xf32> to vector<2x32xf32>
    %134 = arith.addf %132, %133 : vector<2x32xf32>
    %135 = arith.truncf %134 : vector<2x32xf32> to vector<2x32xbf16>
    %c0_60 = arith.constant 0 : index
    %c0_61 = arith.constant 0 : index
    %136 = vector.load %arg2[%c0_60, %c0_61] : memref<2x32xf32, #tpu.memory_space<vmem>>, vector<2x32xf32>
    %137 = arith.truncf %136 : vector<2x32xf32> to vector<2x32xbf16>
    %138 = tpu.concatenate %135, %137 in 1 : vector<2x32xbf16>, vector<2x32xbf16> -> vector<2x64xbf16>
    %c0_62 = arith.constant 0 : index
    %c0_63 = arith.constant 0 : index
    %139 = vector.load %arg16[%c0_62, %c0_63] : memref<3x128xf32, #tpu.memory_space<vmem>>, vector<3x128xf32>
    %c0_64 = arith.constant 0 : index
    %c0_65 = arith.constant 0 : index
    %140 = vector.load %arg12[%c0_64, %c0_65] : memref<64x128xbf16, #tpu.memory_space<vmem>>, vector<64x128xbf16>
    %cst_66 = arith.constant dense<0.000000e+00> : vector<2x128xf32>
    %141 = tpu.matmul %138, %140, %cst_66 {dimension_numbers = #tpu.dot_dimension_numbers<[1], [0], [0], [1], [0, 0, 1, 1], [], []>} : vector<2x64xbf16>, vector<64x128xbf16>, vector<2x128xf32> -> vector<2x128xf32>
    %c0_67 = arith.constant 0 : index
    %c0_68 = arith.constant 0 : index
    %142 = vector.load %arg13[%c0_67, %c0_68] : memref<1x128xf32, #tpu.memory_space<vmem>>, vector<1x128xf32>
    %143 = vector.broadcast %142 : vector<1x128xf32> to vector<2x128xf32>
    %144 = arith.addf %141, %143 : vector<2x128xf32>
    %cst_69 = arith.constant 0.000000e+00 : f32
    %145 = vector.broadcast %cst_69 : f32 to vector<2x128xf32>
    %146 = arith.maximumf %144, %145 : vector<2x128xf32>
    %147 = arith.truncf %146 : vector<2x128xf32> to vector<2x128xbf16>
    %c0_70 = arith.constant 0 : index
    %c0_71 = arith.constant 0 : index
    %148 = vector.load %arg15[%c0_70, %c0_71] : memref<128x128xbf16, #tpu.memory_space<vmem>>, vector<128x128xbf16>
    %cst_72 = arith.constant dense<0.000000e+00> : vector<2x128xf32>
    %149 = tpu.matmul %147, %148, %cst_72 {dimension_numbers = #tpu.dot_dimension_numbers<[1], [0], [0], [1], [0, 0, 1, 1], [], []>} : vector<2x128xbf16>, vector<128x128xbf16>, vector<2x128xf32> -> vector<2x128xf32>
    %c0_73 = arith.constant 0 : index
    %c0_74 = arith.constant 0 : index
    %150 = vector.load %arg14[%c0_73, %c0_74] : memref<64x128xbf16, #tpu.memory_space<vmem>>, vector<64x128xbf16>
    %cst_75 = arith.constant dense<0.000000e+00> : vector<2x128xf32>
    %151 = tpu.matmul %138, %150, %cst_75 {dimension_numbers = #tpu.dot_dimension_numbers<[1], [0], [0], [1], [0, 0, 1, 1], [], []>} : vector<2x64xbf16>, vector<64x128xbf16>, vector<2x128xf32> -> vector<2x128xf32>
    %152 = arith.addf %149, %151 : vector<2x128xf32>
    %153 = vector.extract_strided_slice %139 {offsets = [0, 0], sizes = [1, 128], strides = [1, 1]} : vector<3x128xf32> to vector<1x128xf32>
    %154 = vector.broadcast %153 : vector<1x128xf32> to vector<2x128xf32>
    %155 = arith.addf %152, %154 : vector<2x128xf32>
    %c0_76 = arith.constant 0 : index
    %c0_77 = arith.constant 0 : index
    %156 = vector.load %arg18[%c0_76, %c0_77] : memref<2x128xf32, #tpu.memory_space<vmem>>, vector<2x128xf32>
    tpu.vector_store %arg18[%c0_76, %c0_77], %155 {strides = array<i32>} : memref<2x128xf32, #tpu.memory_space<vmem>>, vector<2x128xf32>,
    %157 = arith.subf %155, %155 : vector<2x128xf32>
    %158 = arith.mulf %157, %157 : vector<2x128xf32>
    %cst_78 = arith.constant 9.99999974E-6 : f32
    %159 = vector.broadcast %cst_78 : f32 to vector<2x128xf32>
    %160 = arith.addf %158, %159 : vector<2x128xf32>
    %161 = math.rsqrt %160 : vector<2x128xf32>
    %162 = arith.mulf %157, %161 : vector<2x128xf32>
    %163 = vector.extract_strided_slice %139 {offsets = [1, 0], sizes = [1, 128], strides = [1, 1]} : vector<3x128xf32> to vector<1x128xf32>
    %164 = vector.broadcast %163 : vector<1x128xf32> to vector<2x128xf32>
    %165 = arith.mulf %162, %164 : vector<2x128xf32>
    %166 = vector.extract_strided_slice %139 {offsets = [2, 0], sizes = [1, 128], strides = [1, 1]} : vector<3x128xf32> to vector<1x128xf32>
    %167 = vector.broadcast %166 : vector<1x128xf32> to vector<2x128xf32>
    %168 = arith.addf %165, %167 : vector<2x128xf32>
    %c0_79 = arith.constant 0 : index
    %c0_80 = arith.constant 0 : index
    %169 = vector.load %arg17[%c0_79, %c0_80] : memref<2x128xf32, #tpu.memory_space<vmem>>, vector<2x128xf32>
    tpu.vector_store %arg17[%c0_79, %c0_80], %168 {strides = array<i32>} : memref<2x128xf32, #tpu.memory_space<vmem>>, vector<2x128xf32>,
    return
  }
  func.func @transform_0(%arg0: i32) -> (i32, i32) {
    %c0_i32 = arith.constant 0 : i32
    %c0_i32_0 = arith.constant 0 : i32
    return %arg0, %c0_i32 : i32, i32
  }
  func.func @transform_1(%arg0: i32) -> (i32, i32) {
    %c0_i32 = arith.constant 0 : i32
    %c0_i32_0 = arith.constant 0 : i32
    return %arg0, %c0_i32 : i32, i32
  }
  func.func @transform_2(%arg0: i32) -> (i32, i32, i32) {
    %c0_i32 = arith.constant 0 : i32
    %c0_i32_0 = arith.constant 0 : i32
    %c0_i32_1 = arith.constant 0 : i32
    %c0_i32_2 = arith.constant 0 : i32
    return %c0_i32, %c0_i32_0, %c0_i32_1 : i32, i32, i32
  }
  func.func @transform_3(%arg0: i32) -> (i32, i32, i32) {
    %c0_i32 = arith.constant 0 : i32
    %c0_i32_0 = arith.constant 0 : i32
    %c0_i32_1 = arith.constant 0 : i32
    %c0_i32_2 = arith.constant 0 : i32
    return %c0_i32, %c0_i32_0, %c0_i32_1 : i32, i32, i32
  }
  func.func @transform_4(%arg0: i32) -> (i32, i32, i32) {
    %c0_i32 = arith.constant 0 : i32
    %c0_i32_0 = arith.constant 0 : i32
    %c0_i32_1 = arith.constant 0 : i32
    %c0_i32_2 = arith.constant 0 : i32
    return %c0_i32, %c0_i32_0, %c0_i32_1 : i32, i32, i32
  }
  func.func @transform_5(%arg0: i32) -> (i32, i32, i32) {
    %c0_i32 = arith.constant 0 : i32
    %c0_i32_0 = arith.constant 0 : i32
    %c0_i32_1 = arith.constant 0 : i32
    %c0_i32_2 = arith.constant 0 : i32
    return %c0_i32, %c0_i32_0, %c0_i32_1 : i32, i32, i32
  }
  func.func @transform_6(%arg0: i32) -> (i32, i32) {
    %c0_i32 = arith.constant 0 : i32
    %c0_i32_0 = arith.constant 0 : i32
    %c0_i32_1 = arith.constant 0 : i32
    return %c0_i32, %c0_i32_0 : i32, i32
  }
  func.func @transform_7(%arg0: i32) -> (i32, i32) {
    %c0_i32 = arith.constant 0 : i32
    %c0_i32_0 = arith.constant 0 : i32
    %c0_i32_1 = arith.constant 0 : i32
    return %c0_i32, %c0_i32_0 : i32, i32
  }
  func.func @transform_8(%arg0: i32) -> (i32, i32) {
    %c0_i32 = arith.constant 0 : i32
    %c0_i32_0 = arith.constant 0 : i32
    %c0_i32_1 = arith.constant 0 : i32
    return %c0_i32, %c0_i32_0 : i32, i32
  }
  func.func @transform_9(%arg0: i32) -> (i32, i32) {
    %c0_i32 = arith.constant 0 : i32
    %c0_i32_0 = arith.constant 0 : i32
    %c0_i32_1 = arith.constant 0 : i32
    return %c0_i32, %c0_i32_0 : i32, i32
  }
  func.func @transform_10(%arg0: i32) -> (i32, i32) {
    %c0_i32 = arith.constant 0 : i32
    %c0_i32_0 = arith.constant 0 : i32
    %c0_i32_1 = arith.constant 0 : i32
    return %c0_i32, %c0_i32_0 : i32, i32
  }
  func.func @transform_11(%arg0: i32) -> (i32, i32) {
    %c0_i32 = arith.constant 0 : i32
    %c0_i32_0 = arith.constant 0 : i32
    %c0_i32_1 = arith.constant 0 : i32
    return %c0_i32, %c0_i32_0 : i32, i32
  }
  func.func @transform_12(%arg0: i32) -> (i32, i32) {
    %c0_i32 = arith.constant 0 : i32
    %c0_i32_0 = arith.constant 0 : i32
    %c0_i32_1 = arith.constant 0 : i32
    return %c0_i32, %c0_i32_0 : i32, i32
  }
  func.func @transform_13(%arg0: i32) -> (i32, i32) {
    %c0_i32 = arith.constant 0 : i32
    %c0_i32_0 = arith.constant 0 : i32
    %c0_i32_1 = arith.constant 0 : i32
    return %c0_i32, %c0_i32_0 : i32, i32
  }
  func.func @transform_14(%arg0: i32) -> (i32, i32) {
    %c0_i32 = arith.constant 0 : i32
    %c0_i32_0 = arith.constant 0 : i32
    %c0_i32_1 = arith.constant 0 : i32
    return %c0_i32, %c0_i32_0 : i32, i32
  }
  func.func @transform_15(%arg0: i32) -> (i32, i32) {
    %c0_i32 = arith.constant 0 : i32
    %c0_i32_0 = arith.constant 0 : i32
    %c0_i32_1 = arith.constant 0 : i32
    return %c0_i32, %c0_i32_0 : i32, i32
  }
  func.func @transform_16(%arg0: i32) -> (i32, i32) {
    %c0_i32 = arith.constant 0 : i32
    %c0_i32_0 = arith.constant 0 : i32
    return %arg0, %c0_i32 : i32, i32
  }
  func.func @transform_17(%arg0: i32) -> (i32, i32) {
    %c0_i32 = arith.constant 0 : i32
    %c0_i32_0 = arith.constant 0 : i32
    return %arg0, %c0_i32 : i32, i32
  }
}

</mosaic_0001>

<bundles_post_ra>
// kernel: decoder_forward.1
= control target key start
LH: loop header
LB: loop body
LE: loop exit
PB: predicated region body
PF: predicated region fallthrough
CT: control target
= control target key end

     0   :  { %s2196_s0 = inlined_call_operand.vmem [shape: f32[2,32], index: 0, kind: input, shape index: {}]   ;;  %s2197_s1 = inlined_call_operand.vmem [shape: f32[2,32], index: 1, kind: input, shape index: {}]   ;;  %s2198_s2 = inlined_call_operand.hbm [shape: bf16[2,32,32], index: 2, kind: input, shape index: {}]   ;;  %s2199_s3 = inlined_call_operand.hbm [shape: bf16[2,32,32], index: 3, kind: input, shape index: {}]   ;;  %s2200_s4 = inlined_call_operand.hbm [shape: bf16[2,32,32], index: 4, kind: input, shape index: {}]   ;;  %s2201_s5 = inlined_call_operand.hbm [shape: f32[2,4,32], index: 5, kind: input, shape index: {}]   ;;  %s2202_s6 = inlined_call_operand.vmem [shape: bf16[32,32], index: 6, kind: input, shape index: {}]   ;;  %s2203_s7 = inlined_call_operand.hbm [shape: bf16[32,32], index: 7, kind: input, shape index: {}]   ;;  %s2204_s8 = inlined_call_operand.hbm [shape: bf16[32,32], index: 8, kind: input, shape index: {}]   ;;  %s2205_s9 = inlined_call_operand.vmem [shape: f32[1,32], index: 9, kind: input, shape index: {}]   ;;  %s2206_s10 = inlined_call_operand.hbm [shape: f32[3,32], index: 10, kind: input, shape index: {}]   ;;  %s2207_s11 = inlined_call_operand.hbm [shape: bf16[64,128], index: 11, kind: input, shape index: {}]   ;;  %s2208_s12 = inlined_call_operand.hbm [shape: f32[1,128], index: 12, kind: input, shape index: {}]   ;;  %s2209_s13 = inlined_call_operand.hbm [shape: bf16[64,128], index: 13, kind: input, shape index: {}]   ;;  %s2210_s14 = inlined_call_operand.vmem [shape: bf16[128,128], index: 14, kind: input, shape index: {}]   ;;  %s2211_s15 = inlined_call_operand.hbm [shape: f32[3,128], index: 15, kind: input, shape index: {}]   ;;  %s2212_s16 = inlined_call_operand.hbm [shape: f32[2,128], index: 16, kind: output, shape index: {0}]   ;;  %s2213_s17 = inlined_call_operand.hbm [shape: f32[2,128], index: 17, kind: output, shape index: {1}]  }
   0x1   :  { %2214 = sst [smem:[#allocation31_spill]] %s2196_s0 }
   0x2   :  { %2215 = sst [smem:[#allocation32_spill]] %s2197_s1 }
   0x3   :  { %23 = vsyncpa [#allocation3], 0 }
   0x4   :  { %24 = vsyncpa [#allocation6], 0 }
   0x5   :  { %25 = vsyncpa [#allocation9], 0 }
   0x6   :  { %26 = vsyncpa [#allocation12], 0 }
   0x7   :  { %27 = vsyncpa [#allocation15], 0 }
   0x8   :  { %28 = vsyncpa [#allocation18], 0 }
   0x9   :  { %29 = vsyncpa [#allocation4], 0 }
   0xa   :  { %30 = vsyncpa [#allocation22], 0  ;;  %s1739_s24 = smov [#allocation5]   ;;  %s1740_s26 = smov [#allocation8]  }
   0xb   :  { %s52_s25 = sshll.u32 %s1739_s24, 4  ;;  %s76_s27 = sshll.u32 %s1740_s26, 4  ;;  %s53_s25 = int_to_ptr.vmem [resolvable:$true] %s52_s25  ;;  %s1847_s27 = int_to_ptr.vmem [resolvable:$true] %s76_s27 }
   0xc   :  { %s1437_s0 = scalar_lea.hbm %s2199_s3, 512 }
   0xd   :  { %p1438_p0 = scmp.ne.s32.totalorder %s2199_s3, %s1437_s0  ;;  %p1441_p1 = scmp.lt.u32.totalorder %s1437_s0, %s2199_s3 }
   0xf   :  { %p1443_p2 = pnand %p1441_p1, %p1438_p0 }
  0x11   :  { %1446 = shalt.err (!%p1443_p2)
}
  0x12   :  { %s1447_s20 = scalar_lea.vmem %s53_s25, 512  ;;  %p1452_p4 = scmp.lt.s32.totalorder %s53_s25, %s53_s25 }
  0x13   :  { %p1448_p3 = scmp.ne.s32.totalorder %s53_s25, %s1447_s20  ;;  %p1453_p5 = scmp.lt.s32.totalorder %s1447_s20, %s1447_s20 }
  0x15   :  { %p1454_p6 = por %p1453_p5, %p1452_p4 }
  0x17   :  { %p1455_p7 = pnand %p1454_p6, %p1448_p3 }
  0x19   :  { %1458 = shalt.err (!%p1455_p7)
}
  0x1a   :  { %s1741_s21 = smov 64   ;;  %s1742_s22 = smov 4  }
  0x1b   :  { %58 = dma.hbm_to_vmem [thread:$0]  %s2199_s3, 512, %s53_s25, [#allocation6], %s1741_s21, %s1741_s21, %s1742_s22  }
  0x1c   :  { %s1459_s29 = scalar_lea.hbm %s2201_s5, 128 }
  0x1d   :  { %p1460_p8 = scmp.ne.s32.totalorder %s2201_s5, %s1459_s29  ;;  %p1463_p9 = scmp.lt.u32.totalorder %s1459_s29, %s2201_s5 }
  0x1f   :  { %p1465_p10 = pnand %p1463_p9, %p1460_p8 }
  0x21   :  { %1468 = shalt.err (!%p1465_p10)
}
  0x22   :  { %s1469_s1 = scalar_lea.vmem %s1847_s27, 128  ;;  %p1474_p12 = scmp.lt.s32.totalorder %s1847_s27, %s1847_s27 }
  0x23   :  { %p1470_p11 = scmp.ne.s32.totalorder %s1847_s27, %s1469_s1  ;;  %p1475_p13 = scmp.lt.s32.totalorder %s1469_s1, %s1469_s1 }
  0x25   :  { %p1476_p0 = por %p1475_p13, %p1474_p12 }
  0x27   :  { %p1477_p1 = pnand %p1476_p0, %p1470_p11 }
  0x29   :  { %1480 = shalt.err (!%p1477_p1)
}
  0x2a   :  { %82 = dma.hbm_to_vmem [thread:$0]  %s2201_s5, 128, %s1847_s27, [#allocation9], %s1741_s21, %s1741_s21, %s1742_s22  }
  0x2b   :  { %s1743_s20 = smov [#allocation11]   ;;  %s1744_s24 = smov [#allocation14]  }
  0x2c   :  { %s102_s23 = sshll.u32 %s1743_s20, 4  ;;  %s126_s26 = sshll.u32 %s1744_s24, 4  ;;  %s103_s23 = int_to_ptr.vmem [resolvable:$true] %s102_s23  ;;  %s1884_s26 = int_to_ptr.vmem [resolvable:$true] %s126_s26 }
  0x2d   :  { %s1481_s0 = scalar_lea.hbm %s2204_s8, 256 }
  0x2e   :  { %p1482_p2 = scmp.ne.s32.totalorder %s2204_s8, %s1481_s0  ;;  %p1485_p3 = scmp.lt.u32.totalorder %s1481_s0, %s2204_s8 }
  0x30   :  { %p1487_p4 = pnand %p1485_p3, %p1482_p2 }
  0x32   :  { %1490 = shalt.err (!%p1487_p4)
}
  0x33   :  { %s1491_s5 = scalar_lea.vmem %s103_s23, 256  ;;  %p1496_p6 = scmp.lt.s32.totalorder %s103_s23, %s103_s23 }
  0x34   :  { %p1492_p5 = scmp.ne.s32.totalorder %s103_s23, %s1491_s5  ;;  %p1497_p7 = scmp.lt.s32.totalorder %s1491_s5, %s1491_s5 }
  0x36   :  { %p1498_p8 = por %p1497_p7, %p1496_p6 }
  0x38   :  { %p1499_p9 = pnand %p1498_p8, %p1492_p5 }
  0x3a   :  { %1502 = shalt.err (!%p1499_p9)
}
  0x3b   :  { %108 = dma.hbm_to_vmem [thread:$0]  %s2204_s8, 256, %s103_s23, [#allocation12], %s1741_s21, %s1741_s21, %s1742_s22  }
  0x3c   :  { %s1503_s24 = scalar_lea.hbm %s2207_s11, 512 }
  0x3d   :  { %p1504_p10 = scmp.ne.s32.totalorder %s2207_s11, %s1503_s24  ;;  %p1507_p11 = scmp.lt.u32.totalorder %s1503_s24, %s2207_s11 }
  0x3f   :  { %p1509_p12 = pnand %p1507_p11, %p1504_p10 }
  0x41   :  { %1512 = shalt.err (!%p1509_p12)
}
  0x42   :  { %s1513_s18 = scalar_lea.vmem %s1884_s26, 512  ;;  %p1518_p0 = scmp.lt.s32.totalorder %s1884_s26, %s1884_s26 }
  0x43   :  { %p1514_p13 = scmp.ne.s32.totalorder %s1884_s26, %s1513_s18  ;;  %p1519_p1 = scmp.lt.s32.totalorder %s1513_s18, %s1513_s18 }
  0x45   :  { %p1520_p2 = por %p1519_p1, %p1518_p0 }
  0x47   :  { %p1521_p3 = pnand %p1520_p2, %p1514_p13 }
  0x49   :  { %1524 = shalt.err (!%p1521_p3)
}
  0x4a   :  { %132 = dma.hbm_to_vmem [thread:$0]  %s2207_s11, 512, %s1884_s26, [#allocation15], %s1741_s21, %s1741_s21, %s1742_s22  }
  0x4b   :  { %s1745_s19 = smov [#allocation17]   ;;  %s1746_s5 = smov [#allocation2]  }
  0x4c   :  { %s148_s1 = sshll.u32 %s1745_s19, 4  ;;  %s40_s27 = sshll.u32 %s1746_s5, 4  ;;  %s149_s1 = int_to_ptr.vmem [resolvable:$true] %s148_s1  ;;  %s1921_s27 = int_to_ptr.vmem [resolvable:$true] %s40_s27 }
  0x4d   :  { %s1525_s20 = scalar_lea.hbm %s2209_s13, 512 }
  0x4e   :  { %p1526_p4 = scmp.ne.s32.totalorder %s2209_s13, %s1525_s20  ;;  %p1529_p5 = scmp.lt.u32.totalorder %s1525_s20, %s2209_s13 }
  0x50   :  { %p1531_p6 = pnand %p1529_p5, %p1526_p4 }
  0x52   :  { %1534 = shalt.err (!%p1531_p6)
}
  0x53   :  { %s1535_s11 = scalar_lea.vmem %s149_s1, 512  ;;  %p1540_p8 = scmp.lt.s32.totalorder %s149_s1, %s149_s1 }
  0x54   :  { %p1536_p7 = scmp.ne.s32.totalorder %s149_s1, %s1535_s11  ;;  %p1541_p9 = scmp.lt.s32.totalorder %s1535_s11, %s1535_s11 }
  0x56   :  { %p1542_p10 = por %p1541_p9, %p1540_p8 }
  0x58   :  { %p1543_p11 = pnand %p1542_p10, %p1536_p7 }
  0x5a   :  { %1546 = shalt.err (!%p1543_p11)
}
  0x5b   :  { %154 = dma.hbm_to_vmem [thread:$0]  %s2209_s13, 512, %s149_s1, [#allocation18], %s1741_s21, %s1741_s21, %s1742_s22  }
  0x5c   :  { %s1547_s23 = scalar_lea.hbm %s2198_s2, 512 }
  0x5d   :  { %p1548_p12 = scmp.ne.s32.totalorder %s2198_s2, %s1547_s23  ;;  %p1551_p13 = scmp.lt.u32.totalorder %s1547_s23, %s2198_s2 }
  0x5f   :  { %p1553_p0 = pnand %p1551_p13, %p1548_p12 }
  0x61   :  { %1556 = shalt.err (!%p1553_p0)
}
  0x62   :  { %s1557_s20 = scalar_lea.vmem %s1921_s27, 512  ;;  %p1562_p2 = scmp.lt.s32.totalorder %s1921_s27, %s1921_s27 }
  0x63   :  { %p1558_p1 = scmp.ne.s32.totalorder %s1921_s27, %s1557_s20  ;;  %p1563_p3 = scmp.lt.s32.totalorder %s1557_s20, %s1557_s20 }
  0x65   :  { %p1564_p4 = por %p1563_p3, %p1562_p2 }
  0x67   :  { %p1565_p5 = pnand %p1564_p4, %p1558_p1 }
  0x69   :  { %1568 = shalt.err (!%p1565_p5)
}
  0x6a   :  { %46 = dma.hbm_to_vmem [thread:$0]  %s2198_s2, 512, %s1921_s27, [#allocation3], %s1741_s21, %s1741_s21, %s1742_s22  }
  0x6b   :  { %s1747_s24 = smov [#allocation7]   ;;  %s1748_s29 = smov [#allocation10]  }
  0x6c   :  { %s64_s28 = sshll.u32 %s1747_s24, 4  ;;  %s90_s0 = sshll.u32 %s1748_s29, 4  ;;  %s65_s28 = int_to_ptr.vmem [resolvable:$true] %s64_s28  ;;  %s1958_s0 = int_to_ptr.vmem [resolvable:$true] %s90_s0 }
  0x6d   :  { %s1569_s30 = scalar_lea.hbm %s2200_s4, 512 }
  0x6e   :  { %p1570_p6 = scmp.ne.s32.totalorder %s2200_s4, %s1569_s30  ;;  %p1573_p7 = scmp.lt.u32.totalorder %s1569_s30, %s2200_s4 }
  0x70   :  { %p1575_p8 = pnand %p1573_p7, %p1570_p6 }
  0x72   :  { %1578 = shalt.err (!%p1575_p8)
}
  0x73   :  { %s1579_s2 = scalar_lea.vmem %s65_s28, 512  ;;  %p1584_p10 = scmp.lt.s32.totalorder %s65_s28, %s65_s28 }
  0x74   :  { %p1580_p9 = scmp.ne.s32.totalorder %s65_s28, %s1579_s2  ;;  %p1585_p11 = scmp.lt.s32.totalorder %s1579_s2, %s1579_s2 }
  0x76   :  { %p1586_p12 = por %p1585_p11, %p1584_p10 }
  0x78   :  { %p1587_p13 = pnand %p1586_p12, %p1580_p9 }
  0x7a   :  { %1590 = shalt.err (!%p1587_p13)
}
  0x7b   :  { %70 = dma.hbm_to_vmem [thread:$0]  %s2200_s4, 512, %s65_s28, [#allocation6], %s1741_s21, %s1741_s21, %s1742_s22  }
  0x7c   :  { %s1591_s20 = scalar_lea.hbm %s2203_s7, 256 }
  0x7d   :  { %p1592_p0 = scmp.ne.s32.totalorder %s2203_s7, %s1591_s20  ;;  %p1595_p1 = scmp.lt.u32.totalorder %s1591_s20, %s2203_s7 }
  0x7f   :  { %p1597_p2 = pnand %p1595_p1, %p1592_p0 }
  0x81   :  { %1600 = shalt.err (!%p1597_p2)
}
  0x82   :  { %s1601_s11 = scalar_lea.vmem %s1958_s0, 256  ;;  %p1606_p4 = scmp.lt.s32.totalorder %s1958_s0, %s1958_s0 }
  0x83   :  { %p1602_p3 = scmp.ne.s32.totalorder %s1958_s0, %s1601_s11  ;;  %p1607_p5 = scmp.lt.s32.totalorder %s1601_s11, %s1601_s11 }
  0x85   :  { %p1608_p6 = por %p1607_p5, %p1606_p4 }
  0x87   :  { %p1609_p7 = pnand %p1608_p6, %p1602_p3 }
  0x89   :  { %1612 = shalt.err (!%p1609_p7)
}
  0x8a   :  { %96 = dma.hbm_to_vmem [thread:$0]  %s2203_s7, 256, %s1958_s0, [#allocation9], %s1741_s21, %s1741_s21, %s1742_s22  }
  0x8b   :  { %s1749_s26 = smov [#allocation13]   ;;  %s1750_s18 = smov [#allocation16]  }
  0x8c   :  { %s117_s30 = sshll.u32 %s1749_s26, 4  ;;  %s139_s8 = sshll.u32 %s1750_s18, 4  ;;  %s118_s30 = int_to_ptr.vmem [resolvable:$true] %s117_s30  ;;  %s140_s8 = int_to_ptr.vmem [resolvable:$true] %s139_s8 }
  0x8d   :  { %s1613_s2 = scalar_lea.hbm %s2206_s10, 64 }
  0x8e   :  { %p1614_p8 = scmp.ne.s32.totalorder %s2206_s10, %s1613_s2  ;;  %p1617_p9 = scmp.lt.u32.totalorder %s1613_s2, %s2206_s10 }
  0x90   :  { %p1619_p10 = pnand %p1617_p9, %p1614_p8 }
  0x92   :  { %1622 = shalt.err (!%p1619_p10)
}
  0x93   :  { %s1623_s7 = scalar_lea.vmem %s118_s30, 64  ;;  %p1628_p12 = scmp.lt.s32.totalorder %s118_s30, %s118_s30 }
  0x94   :  { %p1624_p11 = scmp.ne.s32.totalorder %s118_s30, %s1623_s7  ;;  %p1629_p13 = scmp.lt.s32.totalorder %s1623_s7, %s1623_s7 }
  0x96   :  { %p1630_p0 = por %p1629_p13, %p1628_p12 }
  0x98   :  { %p1631_p1 = pnand %p1630_p0, %p1624_p11 }
  0x9a   :  { %1634 = shalt.err (!%p1631_p1)
}
  0x9b   :  { %120 = dma.hbm_to_vmem [thread:$0]  %s2206_s10, 64, %s118_s30, [#allocation12]  }
  0x9c   :  { %s1635_s13 = scalar_lea.hbm %s2208_s12, 16 }
  0x9d   :  { %p1636_p2 = scmp.ne.s32.totalorder %s2208_s12, %s1635_s13  ;;  %p1639_p3 = scmp.lt.u32.totalorder %s1635_s13, %s2208_s12 }
  0x9f   :  { %p1641_p4 = pnand %p1639_p3, %p1636_p2 }
  0xa1   :  { %1644 = shalt.err (!%p1641_p4)
}
  0xa2   :  { %s1645_s4 = scalar_lea.vmem %s140_s8, 16  ;;  %s1649_s28 = scalar_lea.vmem %s140_s8, 32 }
  0xa3   :  { %p1646_p5 = scmp.ne.s32.totalorder %s140_s8, %s1645_s4  ;;  %p1650_p6 = scmp.lt.s32.totalorder %s140_s8, %s140_s8 }
  0xa4   :  { %p1651_p7 = scmp.lt.s32.totalorder %s1649_s28, %s1645_s4 }
  0xa6   :  { %p1652_p8 = por %p1651_p7, %p1650_p6 }
  0xa8   :  { %p1653_p9 = pnand %p1652_p8, %p1646_p5 }
  0xaa   :  { %1656 = shalt.err (!%p1653_p9)
}
  0xab   :  { %142 = dma.hbm_to_vmem [thread:$0]  %s2208_s12, 16, %s140_s8, [#allocation15]  }
  0xac   :  { %s1751_s30 = smov [#allocation19]   ;;  %s1657_s2 = scalar_lea.hbm %s2211_s15, 64 }
  0xad   :  { %s163_s18 = sshll.u32 %s1751_s30, 4  ;;  %p1658_p10 = scmp.ne.s32.totalorder %s2211_s15, %s1657_s2  ;;  %s164_s18 = int_to_ptr.vmem [resolvable:$true] %s163_s18 }
  0xae   :  { %p1661_p11 = scmp.lt.u32.totalorder %s1657_s2, %s2211_s15 }
  0xb0   :  { %p1663_p12 = pnand %p1661_p11, %p1658_p10 }
  0xb2   :  { %1666 = shalt.err (!%p1663_p12)
}
  0xb3   :  { %s1667_s7 = scalar_lea.vmem %s164_s18, 64  ;;  %p1672_p0 = scmp.lt.s32.totalorder %s164_s18, %s164_s18 }
  0xb4   :  { %p1668_p13 = scmp.ne.s32.totalorder %s164_s18, %s1667_s7  ;;  %p1673_p1 = scmp.lt.s32.totalorder %s1667_s7, %s1667_s7 }
  0xb6   :  { %p1674_p2 = por %p1673_p1, %p1672_p0 }
  0xb8   :  { %p1675_p3 = pnand %p1674_p2, %p1668_p13 }
  0xba   :  { %1678 = shalt.err (!%p1675_p3)
}
  0xbb   :  { %166 = dma.hbm_to_vmem [thread:$0]  %s2211_s15, 64, %s164_s18, [#allocation18]  }
  0xbc   :  { %1723 = dma.done.wait [#allocation3], 512  }
  0xbd   :  { %1724 = vsyncadd [#allocation3], 4294966784 }
  0xbe   :  { %1725 = dma.done.wait [#allocation6], 1024  }
  0xbf   :  { %1726 = vsyncadd [#allocation6], 4294966272 }
  0xc0   :  { %1727 = dma.done.wait [#allocation9], 384  }
  0xc1   :  { %1728 = vsyncadd [#allocation9], 4294966912 }
  0xc2   :  { %1729 = dma.done.wait [#allocation12], 320  }
  0xc3   :  { %1730 = vsyncadd [#allocation12], 4294966976 }
  0xc4   :  { %1731 = dma.done.wait [#allocation15], 528  }
  0xc5   :  { %1732 = vsyncadd [#allocation15], 4294966768 }
  0xc6   :  { %1733 = dma.done.wait [#allocation18], 576  }
  0xc7   :  { %1734 = vsyncadd [#allocation18], 4294966720  ;;  %v1752_v0 = vmov 0.0   ;;  %vm1753_vm0 = vmmov 0   ;;  %v1395_v1 = vld [vmem:[#allocation2] sm:$0xff]   ;;  %v1396_v2 = vld [vmem:[#allocation2 + $0x8] sm:$0xff]   ;;  %v216_v9 = vlaneseq }
  0xc8   :  { %1261 = vmatprep.subr.bf16.mxu0 %v1752_v0  ;;  %1265 = vmatprep.mubr.msk.bf16.mxu0 %vm1753_vm0, %v1752_v0  ;;  %s2216_s22 = sld [smem:[#allocation31_spill]]  ;;  %vm232_vm1 = vcmask 261120   ;;  %v1397_v5 = vld [vmem:[#allocation7] sm:$0xff]   ;;  %v1398_v6 = vld [vmem:[#allocation7 + $0x8] sm:$0xff]   ;;  %vm390_vm2 = vcmask 254976   ;;  %v1401_v39 = vld [vmem:[#allocation2 + $0x10] sm:$0xff]  }
  0xc9   :  { %1285 = vmatprep.subr.bf16.mxu1 %v1752_v0  ;;  %1289 = vmatprep.mubr.msk.bf16.mxu1 %vm1753_vm0, %v1752_v0  ;;  %v1399_v7 = vld [vmem:[#allocation5] sm:$0xff]   ;;  %v1400_v8 = vld [vmem:[#allocation5 + $0x8] sm:$0xff]   ;;  %v2052_v10 = vshrl.u32 %v216_v9, 7  ;;  %v1402_v40 = vld [vmem:[#allocation7 + $0x10] sm:$0xff]   ;;  %s2217_s11 = sld [smem:[#allocation32_spill]]  ;;  %s1754_s4 = smov 32  }
  0xca   :  { %1262 = vmatpush3.bf16.msra.mxu0 %v1395_v1  ;;  %v203_v12 = vld [vmem:[#allocation8] sm:$0xf]  ;;  %1286 = vmatpush3.bf16.msra.mxu1 %v1401_v39  ;;  %v1403_v41 = vld [vmem:[#allocation2 + $0x18] sm:$0xff]   ;;  %v1405_v54 = vld [vmem:[#allocation5 + $0x10] sm:$0xff]   ;;  %vm891_vm3 = vcmask 523264   ;;  %s1755_s21 = smov [#allocation21]  }
  0xcb   :  { %1263 = vmatprep.subr.bf16.mxu0 %v1752_v0  ;;  %v2055_v11 = vsub.s32 0, %v2052_v10  ;;  %v2062_v25 = vsub.s32 1, %v2052_v10  ;;  %v1404_v42 = vld [vmem:[#allocation7 + $0x18] sm:$0xff]   ;;  %1287 = vmatprep.subr.bf16.mxu1 %v1752_v0  ;;  %v2072_v46 = vsub.s32 2, %v2052_v10  ;;  %v412_v47 = vsub.s32 3, %v2052_v10  ;;  %v1412_v10 = vld [vmem:[#allocation10 + $0x8] sm:$0xff]  }
  0xcc   :  { %v1406_v56 = vld [vmem:[#allocation5 + $0x18] sm:$0xff]   ;;  %v417_v57 = vld [vmem:[#allocation8 + $0x4] sm:$0xf] }
  0xcd   :  { %v219_v13 = vrot.slane %v203_v12, %v2055_v11  ;;  %v388_v26 = vrot.slane %v203_v12, %v2062_v25  ;;  %v408_v48 = vrot.slane %v203_v12, %v2072_v46  ;;  %v413_v51 = vrot.slane %v203_v12, %v412_v47 }
  0xce   :  { %v201_v3 = vld [vmem:[%s2216_s22] sm:$0x3]  ;;  %1264 = vmatpush3.bf16.msra.mxu0 %v1396_v2  ;;  %1288 = vmatpush3.bf16.msra.mxu1 %v1403_v41  ;;  %v436_v58 = vrot.slane %v417_v57, %v2055_v11 }
  0xcf   :  { %v202_v4 = vpack.c.bf16 %v201_v3, %v201_v3  ;;  %1269 = vmatprep.subr.bf16.mxu0 %v1752_v0  ;;  %1301 = vmatprep.subr.bf16.mxu1 %v1752_v0 }
  0xd1   :  { %1266 = vmatmul.mubr.msk.bf16.vlgmr.msra.gmra.mrb[0].mxu0 %vm232_vm1, %v202_v4 }
  0xd2   :  { %1270 = vmatpush3.bf16.msra.mxu0 %v1397_v5  ;;  %1273 = vmatprep.mubr.msk.bf16.mxu0 %vm1753_vm0, %v1752_v0 }
  0xd3   :  { %1271 = vmatprep.subr.bf16.mxu0 %v1752_v0 }
  0xd6   :  { %1272 = vmatpush3.bf16.msra.mxu0 %v1398_v6 }
  0xd7   :  { %1277 = vmatprep.subr.bf16.mxu0 %v1752_v0 }
  0xd9   :  { %1274 = vmatmul.mubr.msk.bf16.vlgmr.msra.gmra.mrb[4].mxu0 %vm232_vm1, %v202_v4 }
  0xda   :  { %1278 = vmatpush3.bf16.msra.mxu0 %v1399_v7  ;;  %1281 = vmatprep.mubr.msk.bf16.mxu0 %vm1753_vm0, %v1752_v0  ;;  %v604_v7 = vrot.slane %v417_v57, %v2062_v25 }
  0xdb   :  { %1279 = vmatprep.subr.bf16.mxu0 %v1752_v0 }
  0xde   :  { %1280 = vmatpush3.bf16.msra.mxu0 %v1400_v8 }
  0xdf   :  { %1293 = vmatprep.subr.bf16.mxu0 %v1752_v0 }
 0x1a4   :  { %v270_v14 = vpop.f32.mrb[0].mxu0 }
 0x1a5   :  { %v271_v15 = vadd.f32 %v270_v14, %v219_v13  ;;  %v1267_v16 = vpop.f32.mrb[1].mxu0 }
 0x1a6   :  { %v273_v17 = vpop.f32.mrb[2].mxu0 }
 0x1a7   :  { %v276_v18 = vmax.f32 %v271_v15, 0.0  ;;  %v1268_v19 = vpop.f32.mrb[3].mxu0 }
 0x1a9   :  { %v277_v20 = vpack.c.bf16 %v276_v18, %v276_v18 }
 0x1ab   :  { %1282 = vmatmul.mubr.msk.bf16.vlgmr.msra.gmra.mrb[8].mxu0 %vm232_vm1, %v277_v20 }
 0x1ac   :  { %v324_v21 = vpop.f32.mrb[4].mxu0  ;;  %1297 = vmatprep.mubr.msk.bf16.mxu0 %vm1753_vm0, %v1752_v0  ;;  %1294 = vmatpush3.bf16.msra.mxu0 %v1402_v40 }
 0x1ad   :  { %v1275_v22 = vpop.f32.mrb[5].mxu0  ;;  %1295 = vmatprep.subr.bf16.mxu0 %v1752_v0 }
 0x1ae   :  { %v327_v23 = vpop.f32.mrb[6].mxu0  ;;  %v1407_v22 = vld [vmem:[%s2202_s6] sm:$0xff]  }
 0x1af   :  { %v1276_v24 = vpop.f32.mrb[7].mxu0  ;;  %v1408_v23 = vld [vmem:[#allocation11] sm:$0xff]  }
 0x1b0   :  { %1296 = vmatpush3.bf16.msra.mxu0 %v1404_v42  ;;  %v1409_v24 = vld [vmem:[%s2202_s6 + $0x8] sm:$0xff]  }
 0x1b1   :  { %1309 = vmatprep.subr.bf16.mxu0 %v1752_v0 }
 0x27e   :  { %v379_v27 = vpop.f32.mrb[8].mxu0 }
 0x27f   :  { %v380_v28 = vadd.f32 %v379_v27, %v324_v21  ;;  %v1283_v29 = vpop.f32.mrb[9].mxu0 }
 0x280   :  { %v382_v30 = vpop.f32.mrb[10].mxu0 }
 0x281   :  { %v1284_v31 = vpop.f32.mrb[11].mxu0  ;;  %v389_v32 = vadd.f32 %v388_v26, %v380_v28  ;;  %v1410_v26 = vld [vmem:[#allocation11 + $0x8] sm:$0xff]   ;;  %v622_v30 = vrot.slane %v417_v57, %v2072_v46 }
 0x283   :  { %v391_v33 = vsel %vm390_vm2, %v389_v32, 0.0 }
 0x284   :  { %392 = vadd.xlane.f32.xlu0 %v391_v33 }
 0x311   :  { %v393_v34 = vpop.xlane.xlu0 %392 }
 0x312   :  { %v395_v35 = vmul.f32 0.03125, %v393_v34 }
 0x314   :  { %v396_v36 = vsub.f32 %v389_v32, %v395_v35  ;;  %v627_v32 = vrot.slane %v417_v57, %v412_v47 }
 0x316   :  { %v397_v37 = vmul.f32 %v396_v36, %v396_v36 }
 0x318   :  { %v398_v38 = vsel %vm390_vm2, %v397_v37, 0.0 }
 0x319   :  { %399 = vadd.xlane.f32.xlu0 %v398_v38  ;;  %v1186_v38 = vld [vmem:[%s2205_s9] ss:$0 sm:$0xff] }
 0x3a6   :  { %v400_v43 = vpop.xlane.xlu0 %399 }
 0x3a7   :  { %v401_v44 = vmul.f32 0.03125, %v400_v43 }
 0x3a9   :  { %v402_v45 = vadd.f32 1e-05, %v401_v44 }
 0x3ab   :  { %1429 = vrsqrt.f32 %v402_v45 }
 0x3b5   :  { %v1430_v49 = vpop.eup %1429 }
 0x3b6   :  { %v404_v50 = vmul.f32 %v1430_v49, %v396_v36  ;;  %v1411_v36 = vld [vmem:[#allocation10] sm:$0xff]  }
 0x3b8   :  { %v409_v52 = vmul.f32 %v408_v48, %v404_v50 }
 0x3ba   :  { %v414_v53 = vadd.f32 %v413_v51, %v409_v52  ;;  %v630_v51 = vld [vmem:[#allocation13] sm:$0x7] }
 0x3bb   :  { %v817_v52 = vrot.slane %v630_v51, %v2055_v11 }
 0x3bc   :  { %v415_v55 = vpack.c.bf16 %v414_v53, %v414_v53 }
 0x3be   :  { %1290 = vmatmul.mubr.msk.bf16.vlgmr.msra.gmra.mrb[0].mxu1 %vm232_vm1, %v415_v55  ;;  %1298 = vmatmul.mubr.msk.bf16.vlgmr.msra.gmra.mrb[12].mxu0 %vm232_vm1, %v415_v55 }
 0x3bf   :  { %1302 = vmatpush3.bf16.msra.mxu1 %v1405_v54  ;;  %1305 = vmatprep.mubr.msk.bf16.mxu1 %vm1753_vm0, %v1752_v0 }
 0x3c0   :  { %1303 = vmatprep.subr.bf16.mxu1 %v1752_v0  ;;  %1313 = vmatprep.mubr.msk.bf16.mxu0 %vm1753_vm0, %v1752_v0 }
 0x3c1   :  { %1310 = vmatpush3.bf16.msra.mxu0 %v1407_v22 }
 0x3c2   :  { %1311 = vmatprep.subr.bf16.mxu0 %v1752_v0 }
 0x3c3   :  { %1304 = vmatpush3.bf16.msra.mxu1 %v1406_v56 }
 0x3c4   :  { %1317 = vmatprep.subr.bf16.mxu1 %v1752_v0 }
 0x3c5   :  { %1312 = vmatpush3.bf16.msra.mxu0 %v1409_v24 }
 0x3c6   :  { %1325 = vmatprep.subr.bf16.mxu0 %v1752_v0 }
 0x491   :  { %v486_v59 = vpop.f32.mrb[0].mxu1  ;;  %v540_v60 = vpop.f32.mrb[12].mxu0 }
 0x492   :  { %v487_v61 = vadd.f32 %v486_v59, %v436_v58  ;;  %v1291_v62 = vpop.f32.mrb[1].mxu1  ;;  %v1299_v63 = vpop.f32.mrb[13].mxu0 }
 0x493   :  { %v489_v1 = vpop.f32.mrb[2].mxu1  ;;  %v543_v2 = vpop.f32.mrb[14].mxu0 }
 0x494   :  { %v492_v3 = vmax.f32 %v487_v61, 0.0  ;;  %v1292_v4 = vpop.f32.mrb[3].mxu1  ;;  %v1300_v5 = vpop.f32.mrb[15].mxu0 }
 0x495   :  { %v1413_v4 = vld [vmem:[#allocation14] sm:$0xff]  }
 0x496   :  { %v493_v6 = vpack.c.bf16 %v492_v3, %v492_v3  ;;  %v1414_v5 = vld [vmem:[#allocation17] sm:$0xff]  }
 0x498   :  { %1306 = vmatmul.mubr.msk.bf16.vlgmr.msra.gmra.mrb[4].mxu1 %vm232_vm1, %v493_v6  ;;  %v1415_v6 = vld [vmem:[#allocation14 + $0x8] sm:$0xff]  }
 0x499   :  { %1321 = vmatprep.mubr.msk.bf16.mxu1 %vm1753_vm0, %v1752_v0  ;;  %1318 = vmatpush3.bf16.msra.mxu1 %v1408_v23 }
 0x49a   :  { %1319 = vmatprep.subr.bf16.mxu1 %v1752_v0 }
 0x49d   :  { %1320 = vmatpush3.bf16.msra.mxu1 %v1410_v26  ;;  %v1421_v26 = vld [vmem:[%s2210_s14] sm:$0xff]  }
 0x49e   :  { %1333 = vmatprep.subr.bf16.mxu1 %v1752_v0 }
 0x56b   :  { %v595_v8 = vpop.f32.mrb[4].mxu1 }
 0x56c   :  { %v596_v9 = vadd.f32 %v595_v8, %v540_v60  ;;  %v1307_v12 = vpop.f32.mrb[5].mxu1  ;;  %v843_v60 = vld [vmem:[%s2217_s11] sm:$0x3] }
 0x56d   :  { %v598_v13 = vpop.f32.mrb[6].mxu1  ;;  %v844_v61 = vpack.c.bf16 %v843_v60, %v843_v60  ;;  %v1417_v8 = vld [vmem:[#allocation14 + $0x10] sm:$0xff]   ;;  %v1419_v12 = vld [vmem:[#allocation14 + $0x18] sm:$0xff]  }
 0x56e   :  { %v1308_v14 = vpop.f32.mrb[7].mxu1  ;;  %v605_v15 = vadd.f32 %v604_v7, %v596_v9  ;;  %v1416_v7 = vld [vmem:[#allocation17 + $0x8] sm:$0xff]   ;;  %v1418_v9 = vld [vmem:[#allocation17 + $0x10] sm:$0xff]   ;;  %v1420_v13 = vld [vmem:[#allocation17 + $0x18] sm:$0xff]  }
 0x570   :  { %v606_v16 = vsel %vm390_vm2, %v605_v15, 0.0 }
 0x571   :  { %607 = vadd.xlane.f32.xlu1 %v606_v16 }
 0x5fe   :  { %v608_v17 = vpop.xlane.xlu1 %607 }
 0x5ff   :  { %v609_v18 = vmul.f32 0.03125, %v608_v17  ;;  %v835_v17 = vrot.slane %v630_v51, %v2062_v25 }
 0x601   :  { %v610_v19 = vsub.f32 %v605_v15, %v609_v18 }
 0x603   :  { %v611_v20 = vmul.f32 %v610_v19, %v610_v19 }
 0x605   :  { %v612_v21 = vsel %vm390_vm2, %v611_v20, 0.0  ;;  %v840_v20 = vrot.slane %v630_v51, %v2072_v46 }
 0x606   :  { %613 = vadd.xlane.f32.xlu1 %v612_v21 }
 0x693   :  { %v614_v27 = vpop.xlane.xlu1 %613 }
 0x694   :  { %v615_v28 = vmul.f32 0.03125, %v614_v27 }
 0x696   :  { %v616_v29 = vadd.f32 1e-05, %v615_v28  ;;  %v1422_v28 = vld [vmem:[%s2210_s14 + $0x8] sm:$0xff]  }
 0x698   :  { %1431 = vrsqrt.f32 %v616_v29  ;;  %v1423_v29 = vld [vmem:[%s2210_s14 + $0x10] sm:$0xff]  }
 0x6a2   :  { %v1432_v31 = vpop.eup %1431 }
 0x6a3   :  { %v618_v33 = vmul.f32 %v1432_v31, %v610_v19  ;;  %v1425_v31 = vld [vmem:[%s2210_s14 + $0x20] sm:$0xff]  }
 0x6a5   :  { %v623_v34 = vmul.f32 %v622_v30, %v618_v33  ;;  %v1424_v30 = vld [vmem:[%s2210_s14 + $0x18] sm:$0xff]   ;;  %v1427_v33 = vld [vmem:[%s2210_s14 + $0x30] sm:$0xff]  }
 0x6a7   :  { %v628_v35 = vadd.f32 %v627_v32, %v623_v34  ;;  %v1426_v32 = vld [vmem:[%s2210_s14 + $0x28] sm:$0xff]   ;;  %v1428_v34 = vld [vmem:[%s2210_s14 + $0x38] sm:$0xff]   ;;  %s1150_s14 = sshll.u32 %s1755_s21, 4  ;;  %s1151_s14 = int_to_ptr.vmem [resolvable:$true] %s1150_s14 }
 0x6a8   :  { %s1679_s22 = scalar_lea.vmem %s1151_s14, 32  ;;  %p1684_p5 = scmp.lt.s32.totalorder %s1151_s14, %s1151_s14 }
 0x6a9   :  { %v629_v37 = vpack.c.bf16 %v628_v35, %v628_v35  ;;  %v1196_v35 = vld [vmem:[#allocation16] ss:$0 sm:$0xff]  ;;  %p1680_p4 = scmp.ne.s32.totalorder %s1151_s14, %s1679_s22  ;;  %p1685_p6 = scmp.lt.s32.totalorder %s1679_s22, %s1679_s22 }
 0x6ab   :  { %1314 = vmatmul.mubr.msk.bf16.vlgmr.msra.gmra.mrb[16].mxu0 %vm232_vm1, %v629_v37  ;;  %1322 = vmatmul.mubr.msk.bf16.vlgmr.msra.gmra.mrb[8].mxu1 %vm232_vm1, %v629_v37  ;;  %p1686_p7 = por %p1685_p6, %p1684_p5 }
 0x6ac   :  { %1326 = vmatpush3.bf16.msra.mxu0 %v1411_v36  ;;  %1329 = vmatprep.mubr.msk.bf16.mxu0 %vm1753_vm0, %v1752_v0 }
 0x6ad   :  { %1327 = vmatprep.subr.bf16.mxu0 %v1752_v0  ;;  %1341 = vmatprep.mubr.msk.bf16.mxu1 %vm1753_vm0, %v1752_v0  ;;  %p1687_p8 = pnand %p1686_p7, %p1680_p4 }
 0x6ae   :  { %1334 = vmatpush3.bf16.msra.mxu1 %v1413_v4 }
 0x6af   :  { %1335 = vmatprep.subr.bf16.mxu1 %v1752_v0 }
 0x6b0   :  { %1328 = vmatpush3.bf16.msra.mxu0 %v1412_v10 }
 0x6b1   :  { %1345 = vmatprep.subr.bf16.mxu0 %v1752_v0 }
 0x6b2   :  { %1336 = vmatpush3.bf16.msra.mxu1 %v1415_v6 }
 0x6b3   :  { %1337 = vmatprep.subr.bf16.mxu1 %v1752_v0 }
 0x6b6   :  { %1338 = vmatpush3.bf16.msra.mxu1 %v1417_v8 }
 0x6b7   :  { %1339 = vmatprep.subr.bf16.mxu1 %v1752_v0 }
 0x6ba   :  { %1340 = vmatpush3.bf16.msra.mxu1 %v1419_v12 }
 0x6bb   :  { %1357 = vmatprep.subr.bf16.mxu1 %v1752_v0 }
 0x77e   :  { %v699_v39 = vpop.f32.mrb[16].mxu0  ;;  %v753_v40 = vpop.f32.mrb[8].mxu1 }
 0x77f   :  { %v700_v41 = vadd.f32 %v1186_v38, %v699_v39  ;;  %v1315_v42 = vpop.f32.mrb[17].mxu0  ;;  %v1323_v43 = vpop.f32.mrb[9].mxu1 }
 0x780   :  { %v702_v44 = vpop.f32.mrb[18].mxu0  ;;  %v756_v45 = vpop.f32.mrb[10].mxu1 }
 0x781   :  { %v705_v47 = vmax.f32 %v700_v41, 0.0  ;;  %v1316_v48 = vpop.f32.mrb[19].mxu0  ;;  %v1324_v49 = vpop.f32.mrb[11].mxu1 }
 0x783   :  { %v706_v50 = vpack.c.bf16 %v705_v47, %v705_v47  ;;  %v851_v47 = vld [vmem:[#allocation19] sm:$0x7] }
 0x785   :  { %1330 = vmatmul.mubr.msk.bf16.vlgmr.msra.gmra.mrb[20].mxu0 %vm232_vm1, %v706_v50 }
 0x786   :  { %1353 = vmatprep.mubr.msk.bf16.mxu0 %vm1753_vm0, %v1752_v0  ;;  %1346 = vmatpush3.bf16.msra.mxu0 %v1414_v5 }
 0x787   :  { %1347 = vmatprep.subr.bf16.mxu0 %v1752_v0 }
 0x78a   :  { %1348 = vmatpush3.bf16.msra.mxu0 %v1416_v7 }
 0x78b   :  { %1349 = vmatprep.subr.bf16.mxu0 %v1752_v0 }
 0x78e   :  { %1350 = vmatpush3.bf16.msra.mxu0 %v1418_v9 }
 0x78f   :  { %1351 = vmatprep.subr.bf16.mxu0 %v1752_v0 }
 0x792   :  { %1352 = vmatpush3.bf16.msra.mxu0 %v1420_v13 }
 0x858   :  { %v808_v53 = vpop.f32.mrb[20].mxu0 }
 0x859   :  { %v809_v54 = vadd.f32 %v808_v53, %v753_v40  ;;  %v1331_v55 = vpop.f32.mrb[21].mxu0 }
 0x85a   :  { %v811_v56 = vpop.f32.mrb[22].mxu0 }
 0x85b   :  { %v1332_v57 = vpop.f32.mrb[23].mxu0  ;;  %v818_v58 = vadd.f32 %v817_v52, %v809_v54 }
 0x85d   :  { %v819_v59 = vsel %vm390_vm2, %v818_v58, 0.0 }
 0x85e   :  { %820 = vadd.xlane.f32.xlu0 %v819_v59 }
 0x874   :  { %846 = vrot.lane.b32.xlu0 %v844_v61, %s1754_s4 }
 0x8eb   :  { %v821_v62 = vpop.xlane.xlu0 %820 }
 0x8ec   :  { %v822_v63 = vmul.f32 0.03125, %v821_v62 }
 0x8ee   :  { %v823_v1 = vsub.f32 %v818_v58, %v822_v63 }
 0x8ef   :  { %v847_v23 = vpop.permute.xlu0 %846 }
 0x8f0   :  { %v824_v2 = vmul.f32 %v823_v1, %v823_v1 }
 0x8f2   :  { %v825_v3 = vsel %vm390_vm2, %v824_v2, 0.0 }
 0x8f3   :  { %826 = vadd.xlane.f32.xlu1 %v825_v3 }
 0x980   :  { %v827_v14 = vpop.xlane.xlu1 %826 }
 0x981   :  { %v828_v15 = vmul.f32 0.03125, %v827_v14 }
 0x983   :  { %v829_v16 = vadd.f32 1e-05, %v828_v15 }
 0x985   :  { %1433 = vrsqrt.f32 %v829_v16 }
 0x98f   :  { %v1434_v18 = vpop.eup %1433 }
 0x990   :  { %v831_v19 = vmul.f32 %v1434_v18, %v823_v1 }
 0x992   :  { %v836_v21 = vmul.f32 %v835_v17, %v831_v19 }
 0x994   :  { %v841_v22 = vadd.f32 %v840_v20, %v836_v21 }
 0x996   :  { %v842_v24 = vpack.c.bf16 %v841_v22, %v841_v22 }
 0x998   :  { %v850_v27 = vsel %vm232_vm1, %v842_v24, %v847_v23 }
 0x999   :  { %1342 = vmatmul.mubr.msk.bf16.vlgmr.msra.gmra.mrb[12].mxu1 %vm891_vm3, %v850_v27  ;;  %1354 = vmatmul.mubr.msk.bf16.vlgmr.msra.gmra.mrb[24].mxu0 %vm891_vm3, %v850_v27 }
 0x99a   :  { %1358 = vmatpush3.bf16.msra.mxu1 %v1421_v26  ;;  %1373 = vmatprep.mubr.msk.bf16.mxu1 %vm1753_vm0, %v1752_v0 }
 0x99b   :  { %1359 = vmatprep.subr.bf16.mxu1 %v1752_v0 }
 0x99e   :  { %1360 = vmatpush3.bf16.msra.mxu1 %v1422_v28 }
 0x99f   :  { %1361 = vmatprep.subr.bf16.mxu1 %v1752_v0 }
 0x9a2   :  { %1362 = vmatpush3.bf16.msra.mxu1 %v1423_v29 }
 0x9a3   :  { %1363 = vmatprep.subr.bf16.mxu1 %v1752_v0 }
 0x9a6   :  { %1364 = vmatpush3.bf16.msra.mxu1 %v1424_v30 }
 0x9a7   :  { %1365 = vmatprep.subr.bf16.mxu1 %v1752_v0 }
 0x9aa   :  { %1366 = vmatpush3.bf16.msra.mxu1 %v1425_v31 }
 0x9ab   :  { %1367 = vmatprep.subr.bf16.mxu1 %v1752_v0 }
 0x9ae   :  { %1368 = vmatpush3.bf16.msra.mxu1 %v1426_v32 }
 0x9af   :  { %1369 = vmatprep.subr.bf16.mxu1 %v1752_v0 }
 0x9b2   :  { %1370 = vmatpush3.bf16.msra.mxu1 %v1427_v33 }
 0x9b3   :  { %1371 = vmatprep.subr.bf16.mxu1 %v1752_v0  ;;  %v1115_v0 = vrot.slane %v851_v47, %v2055_v11 }
 0x9b6   :  { %1372 = vmatpush3.bf16.msra.mxu1 %v1428_v34 }
 0xa6c   :  { %v928_v36 = vpop.f32.mrb[12].mxu1  ;;  %v1018_v37 = vpop.f32.mrb[24].mxu0 }
 0xa6d   :  { %v929_v10 = vadd.f32 %v1196_v35, %v928_v36  ;;  %v1343_v38 = vpop.f32.mrb[13].mxu1  ;;  %v1355_v39 = vpop.f32.mrb[25].mxu0 }
 0xa6e   :  { %v931_v40 = vpop.f32.mrb[14].mxu1  ;;  %v1021_v41 = vpop.f32.mrb[26].mxu0 }
 0xa6f   :  { %v934_v42 = vmax.f32 %v929_v10, 0.0  ;;  %v1344_v43 = vpop.f32.mrb[15].mxu1  ;;  %v1356_v44 = vpop.f32.mrb[27].mxu0 }
 0xa71   :  { %v935_v45 = vpack.c.bf16 %v934_v42, %v934_v42 }
 0xa73   :  { %1374 = vmatmul.mubr.bf16.vlgmr.msra.gmra.mrb[16].mxu1 %v935_v45 }
 0xb46   :  { %v1106_v48 = vpop.f32.mrb[16].mxu1 }
 0xb47   :  { %v1107_v49 = vadd.f32 %v1106_v48, %v1018_v37  ;;  %v1375_v50 = vpop.f32.mrb[17].mxu1 }
 0xb48   :  { %v1109_v51 = vpop.f32.mrb[18].mxu1 }
 0xb49   :  { %v1116_v52 = vadd.f32 %v1115_v0, %v1107_v49  ;;  %v1376_v53 = vpop.f32.mrb[19].mxu1 }
 0xb4b   :  { %v1118_v54 = vsub.f32 %v1116_v52, %v1116_v52  ;;  %1117 = vst [vmem:[#allocation21] sm:$0x3] %v1116_v52 }
 0xb4c   :  { %1690 = shalt.err (!%p1687_p8)
}
 0xb4d   :  { %s1691_s13 = scalar_lea.hbm %s2213_s17, 32 }
 0xb4e   :  { %p1692_p9 = scmp.ne.s32.totalorder %s2213_s17, %s1691_s13  ;;  %p1695_p10 = scmp.lt.u32.totalorder %s1691_s13, %s2213_s17 }
 0xb50   :  { %p1697_p11 = pnand %p1695_p10, %p1692_p9 }
 0xb52   :  { %1700 = shalt.err (!%p1697_p11)
}
 0xb53   :  { %1153 = dma.vmem_to_hbm [thread:$0]  %s1151_s14, 32, %s2213_s17, [#allocation22]   ;;  %v1119_v11 = vmul.f32 %v1118_v54, %v1118_v54  ;;  %v1126_v56 = vrot.slane %v851_v47, %v2062_v25  ;;  %v1131_v59 = vrot.slane %v851_v47, %v2072_v46 }
 0xb54   :  { %s1756_s4 = smov [#allocation20]  }
 0xb55   :  { %v1120_v55 = vadd.f32 1e-05, %v1119_v11  ;;  %s1140_s28 = sshll.u32 %s1756_s4, 4  ;;  %s1141_s28 = int_to_ptr.vmem [resolvable:$true] %s1140_s28 }
 0xb56   :  { %s1701_s10 = scalar_lea.vmem %s1141_s28, 32  ;;  %p1706_p13 = scmp.lt.s32.totalorder %s1141_s28, %s1141_s28 }
 0xb57   :  { %1435 = vrsqrt.f32 %v1120_v55  ;;  %p1702_p12 = scmp.ne.s32.totalorder %s1141_s28, %s1701_s10  ;;  %p1707_p0 = scmp.lt.s32.totalorder %s1701_s10, %s1701_s10 }
 0xb59   :  { %p1708_p1 = por %p1707_p0, %p1706_p13 }
 0xb5b   :  { %p1709_p2 = pnand %p1708_p1, %p1702_p12 }
 0xb61   :  { %v1436_v57 = vpop.eup %1435 }
 0xb62   :  { %v1122_v58 = vmul.f32 %v1436_v57, %v1118_v54 }
 0xb64   :  { %v1127_v60 = vmul.f32 %v1126_v56, %v1122_v58 }
 0xb66   :  { %v1132_v61 = vadd.f32 %v1131_v59, %v1127_v60 }
 0xb68   :  { %1133 = vst [vmem:[#allocation20] sm:$0x3] %v1132_v61 }
 0xb69   :  { %1712 = shalt.err (!%p1709_p2)
}
 0xb6a   :  { %s1713_s30 = scalar_lea.hbm %s2212_s16, 32 }
 0xb6b   :  { %p1714_p3 = scmp.ne.s32.totalorder %s2212_s16, %s1713_s30  ;;  %p1717_p4 = scmp.lt.u32.totalorder %s1713_s30, %s2212_s16 }
 0xb6d   :  { %p1719_p5 = pnand %p1717_p4, %p1714_p3 }
 0xb6f   :  { %1722 = shalt.err (!%p1719_p5)
}
 0xb70   :  { %1143 = dma.vmem_to_hbm [thread:$0]  %s1141_s28, 32, %s2212_s16, [#allocation4]  }
 0xb71   :  { %1735 = dma.done.wait [#allocation4], 32  }
 0xb72   :  { %1736 = vsyncadd [#allocation4], 4294967264 }
 0xb73   :  { %1737 = dma.done.wait [#allocation22], 32  }
 0xb74   :  { %1738 = vsyncadd [#allocation22], 4294967264 }
 0xb75   :  { %1160 = vsyncpa [#allocation3], 1 }
 0xb76   :  { %1161 = vsyncpa [#allocation6], 1 }
 0xb77   :  { %1162 = vsyncpa [#allocation9], 1 }
 0xb78   :  { %1163 = vsyncpa [#allocation12], 1 }
 0xb79   :  { %1164 = vsyncpa [#allocation15], 1 }
 0xb7a   :  { %1165 = vsyncpa [#allocation18], 1 }
 0xb7b   :  { %1166 = vsyncpa [#allocation4], 1 }
 0xb7c   :  { %1167 = vsyncpa [#allocation22], 1 }

</bundles_post_ra>
